<compile_context>
chip_gen: v6e
topology: v6e:2x2x1
jax: 0.10.0
libtpu: 0.0.40
codegen_flags: <defaults>
</compile_context>

<pallas_src>
import math

import jax
import jax.numpy as jnp
from jax.experimental import pallas as pl
from jax.experimental.pallas import tpu as pltpu

# ----------------------- small config (ModelArgs-consistent) -----------------------
DIM = 64
N_HEADS = 4
N_KV_HEADS = 2
HEAD_DIM = DIM // N_HEADS            # 16
N_REP = N_HEADS // N_KV_HEADS        # 2
MULTIPLE_OF = 32
NORM_EPS = 1e-5
BATCH = 2
SEQ = 8
START_POS = 0
ROPE_THETA = 10000.0

DQ = N_HEADS * HEAD_DIM              # 64
DKV = N_KV_HEADS * HEAD_DIM          # 32
HALF = HEAD_DIM // 2                 # 8
DQH = N_HEADS * HALF                 # 32  (width of the q re-plane / im-plane)
DKH = N_KV_HEADS * HALF              # 16  (width of the k re-plane / im-plane)
QKV_W = 2 * DQH + 2 * DKH + DKV      # 128 (fused q_re|q_im|k_re|k_im|v projection)


def _ffn_hidden_dim(dim, multiple_of, ffn_dim_multiplier=None):
    hidden = 4 * dim
    hidden = int(2 * hidden / 3)
    if ffn_dim_multiplier is not None:
        hidden = int(ffn_dim_multiplier * hidden)
    return multiple_of * ((hidden + multiple_of - 1) // multiple_of)


FFN_DIM = _ffn_hidden_dim(DIM, MULTIPLE_OF)   # 192


# =============================== fused Pallas kernel ===============================
def fused_block_kernel(x_ref, attn_nw_ref, ffn_nw_ref,
                       wqkv_ref, wo_ref, w13_ref, w2_ref,
                       cosq_ref, sinq_ref, cosk_ref, sink_ref,
                       out_ref):
    f32 = jnp.float32
    bf16 = jnp.bfloat16

    x = x_ref[0]                                               # (S, D) f32
    S, D = x.shape

    # ---- attention RMSNorm (f32, VPU) ----
    xn = x * jax.lax.rsqrt(jnp.mean(x * x, axis=-1, keepdims=True) + NORM_EPS)
    xn = xn * attn_nw_ref[...]

    # ---- fused QKV projection: single (S,D)@(D,128) bf16 MXU matmul ----
    qkv = jnp.dot(xn.astype(bf16), wqkv_ref[...],
                  preferred_element_type=f32)                  # (S, 128) f32

    # column layout: [ q_re (32) | q_im (32) | k_re (16) | k_im (16) | v (32) ]
    q_re = qkv[:, 0:DQH]
    q_im = qkv[:, DQH:2 * DQH]
    k_re = qkv[:, 2 * DQH:2 * DQH + DKH]
    k_im = qkv[:, 2 * DQH + DKH:2 * DQH + 2 * DKH]
    v = qkv[:, 2 * DQH + 2 * DKH:]

    # ---- rotary embedding: pure elementwise complex multiply (f32, VPU) ----
    cq, sq = cosq_ref[...], sinq_ref[...]                      # (S, DQH)
    ck, sk = cosk_ref[...], sink_ref[...]                      # (S, DKH)
    qr = (q_re * cq - q_im * sq).astype(bf16)
    qi = (q_im * cq + q_re * sq).astype(bf16)
    kr = (k_re * ck - k_im * sk).astype(bf16)
    ki = (k_im * ck + k_re * sk).astype(bf16)
    v_bf = v.astype(bf16)

    # ---- causal mask generated in-kernel (start_pos = 0 prefill) ----
    row = jax.lax.broadcasted_iota(jnp.int32, (S, S), 0)
    col = jax.lax.broadcasted_iota(jnp.int32, (S, S), 1)
    causal = col <= row

    scale = 1.0 / math.sqrt(HEAD_DIM)
    dn = (((1,), (1,)), ((), ()))                              # q @ k.T contraction

    # ---- all heads of this batch element in ONE grid step ----
    h1 = x                                                     # residual accumulator (f32)
    for h in range(N_HEADS):
        g = h // N_REP                                         # GQA: shared kv head
        # scores = q.k = q_re.k_re + q_im.k_im (planes permuted identically)
        s = jax.lax.dot_general(qr[:, h * HALF:(h + 1) * HALF],
                                kr[:, g * HALF:(g + 1) * HALF],
                                dn, preferred_element_type=f32)
        s = s + jax.lax.dot_general(qi[:, h * HALF:(h + 1) * HALF],
                                    ki[:, g * HALF:(g + 1) * HALF],
                                    dn, preferred_element_type=f32)
        s = jnp.where(causal, s * scale, -jnp.inf)
        p = jnp.exp(s - jnp.max(s, axis=-1, keepdims=True))
        p = p * pl.reciprocal(jnp.sum(p, axis=-1, keepdims=True), approx=True)
        oh = jnp.dot(p.astype(bf16),
                     v_bf[:, g * HEAD_DIM:(g + 1) * HEAD_DIM],
                     preferred_element_type=f32)               # (S, HEAD_DIM)
        # per-head slice of the output projection, accumulated into the residual
        h1 = h1 + jnp.dot(oh.astype(bf16), wo_ref[h], preferred_element_type=f32)

    # ---- FFN RMSNorm (f32) ----
    hn = h1 * jax.lax.rsqrt(jnp.mean(h1 * h1, axis=-1, keepdims=True) + NORM_EPS)
    hn = hn * ffn_nw_ref[...]

    # ---- fused SwiGLU: one (S,D)@(D,2*FFN_DIM) matmul, slice, gate, down-proj ----
    g13 = jnp.dot(hn.astype(bf16), w13_ref[...], preferred_element_type=f32)   # (S, 384)
    a = g13[:, :FFN_DIM]
    b = g13[:, FFN_DIM:]
    gated = (a * jax.nn.sigmoid(a) * b).astype(bf16)
    out_ref[0] = h1 + jnp.dot(gated, w2_ref[...], preferred_element_type=f32)


# ================================ wrapper ==========================================
def _deinterleave_cols(w, n_heads):
    """Split interleaved (re, im) output columns into planar re / im blocks.

    Per head, input column order is (re0, im0, re1, im1, ...); output order is
    (re0..re7) for the re-plane and (im0..im7) for the im-plane.
    """
    d = w.shape[0]
    wr = w.reshape(d, n_heads, HALF, 2)
    return (wr[..., 0].reshape(d, n_heads * HALF),
            wr[..., 1].reshape(d, n_heads * HALF))


def transformer_block_pallas(x, params, freqs_cos, freqs_sin):
    B, S, D = x.shape
    assert D == DIM

    # ---- one-time weight / rope plumbing (pure JAX, outside the kernel) ----
    wq_re, wq_im = _deinterleave_cols(params["wq"], N_HEADS)
    wk_re, wk_im = _deinterleave_cols(params["wk"], N_KV_HEADS)
    wqkv = jnp.concatenate([wq_re, wq_im, wk_re, wk_im, params["wv"]],
                           axis=1).astype(jnp.bfloat16)                     # (D, 128)
    wo_stacked = params["wo"].reshape(N_HEADS, HEAD_DIM, D).astype(jnp.bfloat16)
    w13 = jnp.concatenate([params["w1"], params["w3"]], axis=1).astype(jnp.bfloat16)
    w2 = params["w2"].astype(jnp.bfloat16)

    cos_q = jnp.tile(freqs_cos, (1, N_HEADS))        # (S, DQH)
    sin_q = jnp.tile(freqs_sin, (1, N_HEADS))
    cos_k = jnp.tile(freqs_cos, (1, N_KV_HEADS))     # (S, DKH)
    sin_k = jnp.tile(freqs_sin, (1, N_KV_HEADS))

    attn_nw = params["attn_norm"][None, :]
    ffn_nw = params["ffn_norm"][None, :]

    rep2 = lambda shape: pl.BlockSpec(shape, lambda b: (0, 0))
    rep3 = lambda shape: pl.BlockSpec(shape, lambda b: (0, 0, 0))

    # NOTE(v7x scaling): at these toy dims every weight fits VMEM replicated; at
    # real LLaMA dims the weight in_specs below need a K/N grid axis (tiled
    # wqkv / w13 / w2) plus an explicit vmem_limit_bytes to stay under v7x's
    # 64 MiB VMEM.
    return pl.pallas_call(
        fused_block_kernel,
        out_shape=jax.ShapeDtypeStruct((B, S, D), jnp.float32),
        grid_spec=pltpu.PrefetchScalarGridSpec(
            num_scalar_prefetch=0,
            grid=(B,),
            in_specs=[
                pl.BlockSpec((1, S, D), lambda b: (b, 0, 0)),   # x
                rep2((1, D)),                                   # attention_norm weight
                rep2((1, D)),                                   # ffn_norm weight
                rep2((D, QKV_W)),                               # fused wq|wk|wv (bf16)
                rep3((N_HEADS, HEAD_DIM, D)),                   # wo stacked per head (bf16)
                rep2((D, 2 * FFN_DIM)),                         # fused w1|w3 (bf16)
                rep2((FFN_DIM, D)),                             # w2 (bf16)
                rep2((S, DQH)), rep2((S, DQH)),                 # cos_q, sin_q
                rep2((S, DKH)), rep2((S, DKH)),                 # cos_k, sin_k
            ],
            out_specs=pl.BlockSpec((1, S, D), lambda b: (b, 0, 0)),
        ),
        compiler_params=pltpu.CompilerParams(dimension_semantics=("parallel",)),
    )(x, attn_nw, ffn_nw, wqkv, wo_stacked, w13, w2, cos_q, sin_q, cos_k, sin_k)


# ============================== pure-JAX reference =================================
def reference_block(x, p, cos, sin):
    def rmsnorm(y, w):
        ms = jnp.mean(y * y, axis=-1, keepdims=True)
        return y * jax.lax.rsqrt(ms + NORM_EPS) * w

    B, S, _ = x.shape
    mask = jnp.triu(jnp.full((S, S), -jnp.inf, jnp.float32), k=1)
    xn = rmsnorm(x, p["attn_norm"])
    xq = (xn @ p["wq"]).reshape(B, S, N_HEADS, HEAD_DIM)
    xk = (xn @ p["wk"]).reshape(B, S, N_KV_HEADS, HEAD_DIM)
    xv = (xn @ p["wv"]).reshape(B, S, N_KV_HEADS, HEAD_DIM)

    def rope(t):
        tr = t.reshape(*t.shape[:-1], HEAD_DIM // 2, 2)
        a, b = tr[..., 0], tr[..., 1]
        c = cos[None, :, None, :]
        s = sin[None, :, None, :]
        return jnp.stack([a * c - b * s, a * s + b * c], axis=-1).reshape(t.shape)

    xq, xk = rope(xq), rope(xk)
    keys = jnp.repeat(xk, N_REP, axis=2)
    values = jnp.repeat(xv, N_REP, axis=2)
    q = xq.transpose(0, 2, 1, 3)
    k = keys.transpose(0, 2, 1, 3)
    v = values.transpose(0, 2, 1, 3)
    scores = jnp.einsum("bhqd,bhkd->bhqk", q, k) / math.sqrt(HEAD_DIM)
    scores = jax.nn.softmax(scores + mask[None, None], axis=-1)
    o = jnp.einsum("bhqk,bhkd->bhqd", scores, v)
    o = o.transpose(0, 2, 1, 3).reshape(B, S, -1)
    h = x + o @ p["wo"]
    hn = rmsnorm(h, p["ffn_norm"])
    return h + (jax.nn.silu(hn @ p["w1"]) * (hn @ p["w3"])) @ p["w2"]


# ==================================== main =========================================
if __name__ == "__main__":
    key = jax.random.PRNGKey(0)
    ks = jax.random.split(key, 9)
    scale = 0.05
    params = {
        "wq": jax.random.normal(ks[0], (DIM, DQ), jnp.float32) * scale,
        "wk": jax.random.normal(ks[1], (DIM, DKV), jnp.float32) * scale,
        "wv": jax.random.normal(ks[2], (DIM, DKV), jnp.float32) * scale,
        "wo": jax.random.normal(ks[3], (DQ, DIM), jnp.float32) * scale,
        "w1": jax.random.normal(ks[4], (DIM, FFN_DIM), jnp.float32) * scale,
        "w2": jax.random.normal(ks[5], (FFN_DIM, DIM), jnp.float32) * scale,
        "w3": jax.random.normal(ks[6], (DIM, FFN_DIM), jnp.float32) * scale,
        "attn_norm": jnp.ones((DIM,), jnp.float32),
        "ffn_norm": jnp.ones((DIM,), jnp.float32),
    }
    x = jax.random.normal(ks[7], (BATCH, SEQ, DIM), jnp.float32)

    # precompute_freqs_cis (cos/sin form), positions start_pos .. start_pos+seqlen
    inv_freq = 1.0 / (ROPE_THETA ** (jnp.arange(0, HEAD_DIM, 2, dtype=jnp.float32) / HEAD_DIM))
    t = jnp.arange(START_POS, START_POS + SEQ, dtype=jnp.float32)
    angles = jnp.outer(t, inv_freq)                        # (S, hd/2)
    freqs_cos, freqs_sin = jnp.cos(angles), jnp.sin(angles)

    out = transformer_block_pallas(x, params, freqs_cos, freqs_sin)
    out = jax.block_until_ready(out)

    ref = reference_block(x, params, freqs_cos, freqs_sin)
    assert out.shape == (BATCH, SEQ, DIM)
    assert bool(jnp.allclose(out, ref, atol=2e-2, rtol=2e-2)), "mismatch vs reference"

    print("KERNEL_OK")
</pallas_src>

<mosaic_0001>
module attributes {stable_mosaic.version = 11 : i64} {
  func.func @fused_block_kernel(%arg0: i32, %arg1: memref<1x8x64xf32, #tpu.memory_space<vmem>>, %arg2: memref<1x64xf32, #tpu.memory_space<vmem>>, %arg3: memref<1x64xf32, #tpu.memory_space<vmem>>, %arg4: memref<64x128xbf16, #tpu.memory_space<vmem>>, %arg5: memref<4x16x64xbf16, #tpu.memory_space<vmem>>, %arg6: memref<64x384xbf16, #tpu.memory_space<vmem>>, %arg7: memref<192x64xbf16, #tpu.memory_space<vmem>>, %arg8: memref<8x32xf32, #tpu.memory_space<vmem>>, %arg9: memref<8x32xf32, #tpu.memory_space<vmem>>, %arg10: memref<8x16xf32, #tpu.memory_space<vmem>>, %arg11: memref<8x16xf32, #tpu.memory_space<vmem>>, %arg12: memref<1x8x64xf32, #tpu.memory_space<vmem>>) attributes {dimension_semantics = [#tpu.dimension_semantics<parallel>], iteration_bounds = array<i64: 2>, scalar_prefetch = 0 : i64, scratch_operands = 0 : i64, tpu.core_type = #tpu.core_type<tc>, window_params = [{transform_indices = @transform_0, window_bounds = array<i64: 1, 8, 64>}, {pipeline_mode = #tpu.pipeline_mode<synchronous>, transform_indices = @transform_1, window_bounds = array<i64: 1, 64>}, {pipeline_mode = #tpu.pipeline_mode<synchronous>, transform_indices = @transform_2, window_bounds = array<i64: 1, 64>}, {pipeline_mode = #tpu.pipeline_mode<synchronous>, transform_indices = @transform_3, window_bounds = array<i64: 64, 128>}, {pipeline_mode = #tpu.pipeline_mode<synchronous>, transform_indices = @transform_4, window_bounds = array<i64: 4, 16, 64>}, {pipeline_mode = #tpu.pipeline_mode<synchronous>, transform_indices = @transform_5, window_bounds = array<i64: 64, 384>}, {pipeline_mode = #tpu.pipeline_mode<synchronous>, transform_indices = @transform_6, window_bounds = array<i64: 192, 64>}, {pipeline_mode = #tpu.pipeline_mode<synchronous>, transform_indices = @transform_7, window_bounds = array<i64: 8, 32>}, {pipeline_mode = #tpu.pipeline_mode<synchronous>, transform_indices = @transform_8, window_bounds = array<i64: 8, 32>}, {pipeline_mode = #tpu.pipeline_mode<synchronous>, transform_indices = @transform_9, window_bounds = array<i64: 8, 16>}, {pipeline_mode = #tpu.pipeline_mode<synchronous>, transform_indices = @transform_10, window_bounds = array<i64: 8, 16>}, {transform_indices = @transform_11, window_bounds = array<i64: 1, 8, 64>}]} {
    %c0 = arith.constant 0 : index
    %c0_0 = arith.constant 0 : index
    %c0_1 = arith.constant 0 : index
    %0 = vector.load %arg1[%c0, %c0_0, %c0_1] : memref<1x8x64xf32, #tpu.memory_space<vmem>>, vector<1x8x64xf32>
    %1 = vector.shape_cast %0 : vector<1x8x64xf32> to vector<8x64xf32>
    %2 = arith.mulf %1, %1 : vector<8x64xf32>
    %cst = arith.constant dense<0.000000e+00> : vector<8xf32>
    %3 = vector.multi_reduction <add>, %2, %cst [1] : vector<8x64xf32> to vector<8xf32>
    %4 = vector.shape_cast %3 : vector<8xf32> to vector<8x1xf32>
    %cst_2 = arith.constant 6.400000e+01 : f32
    %5 = vector.broadcast %cst_2 : f32 to vector<8x1xf32>
    %6 = arith.divf %4, %5 : vector<8x1xf32>
    %cst_3 = arith.constant 9.99999974E-6 : f32
    %7 = vector.broadcast %cst_3 : f32 to vector<8x1xf32>
    %8 = arith.addf %6, %7 : vector<8x1xf32>
    %9 = math.rsqrt %8 : vector<8x1xf32>
    %10 = vector.broadcast %9 : vector<8x1xf32> to vector<8x64xf32>
    %11 = arith.mulf %1, %10 : vector<8x64xf32>
    %c0_4 = arith.constant 0 : index
    %c0_5 = arith.constant 0 : index
    %12 = vector.load %arg2[%c0_4, %c0_5] : memref<1x64xf32, #tpu.memory_space<vmem>>, vector<1x64xf32>
    %13 = vector.broadcast %12 : vector<1x64xf32> to vector<8x64xf32>
    %14 = arith.mulf %11, %13 : vector<8x64xf32>
    %15 = arith.truncf %14 : vector<8x64xf32> to vector<8x64xbf16>
    %c0_6 = arith.constant 0 : index
    %c0_7 = arith.constant 0 : index
    %16 = vector.load %arg4[%c0_6, %c0_7] : memref<64x128xbf16, #tpu.memory_space<vmem>>, vector<64x128xbf16>
    %cst_8 = arith.constant dense<0.000000e+00> : vector<8x128xf32>
    %17 = tpu.matmul %15, %16, %cst_8 {dimension_numbers = #tpu.dot_dimension_numbers<[1], [0], [0], [1], [0, 0, 1, 1], [], []>} : vector<8x64xbf16>, vector<64x128xbf16>, vector<8x128xf32> -> vector<8x128xf32>
    %18 = vector.extract_strided_slice %17 {offsets = [0, 0], sizes = [8, 32], strides = [1, 1]} : vector<8x128xf32> to vector<8x32xf32>
    %19 = vector.extract_strided_slice %17 {offsets = [0, 32], sizes = [8, 32], strides = [1, 1]} : vector<8x128xf32> to vector<8x32xf32>
    %20 = vector.extract_strided_slice %17 {offsets = [0, 64], sizes = [8, 16], strides = [1, 1]} : vector<8x128xf32> to vector<8x16xf32>
    %21 = vector.extract_strided_slice %17 {offsets = [0, 80], sizes = [8, 16], strides = [1, 1]} : vector<8x128xf32> to vector<8x16xf32>
    %22 = vector.extract_strided_slice %17 {offsets = [0, 96], sizes = [8, 32], strides = [1, 1]} : vector<8x128xf32> to vector<8x32xf32>
    %c0_9 = arith.constant 0 : index
    %c0_10 = arith.constant 0 : index
    %23 = vector.load %arg8[%c0_9, %c0_10] : memref<8x32xf32, #tpu.memory_space<vmem>>, vector<8x32xf32>
    %c0_11 = arith.constant 0 : index
    %c0_12 = arith.constant 0 : index
    %24 = vector.load %arg9[%c0_11, %c0_12] : memref<8x32xf32, #tpu.memory_space<vmem>>, vector<8x32xf32>
    %c0_13 = arith.constant 0 : index
    %c0_14 = arith.constant 0 : index
    %25 = vector.load %arg10[%c0_13, %c0_14] : memref<8x16xf32, #tpu.memory_space<vmem>>, vector<8x16xf32>
    %c0_15 = arith.constant 0 : index
    %c0_16 = arith.constant 0 : index
    %26 = vector.load %arg11[%c0_15, %c0_16] : memref<8x16xf32, #tpu.memory_space<vmem>>, vector<8x16xf32>
    %27 = arith.mulf %18, %23 : vector<8x32xf32>
    %28 = arith.mulf %19, %24 : vector<8x32xf32>
    %29 = arith.subf %27, %28 : vector<8x32xf32>
    %30 = arith.truncf %29 : vector<8x32xf32> to vector<8x32xbf16>
    %31 = arith.mulf %19, %23 : vector<8x32xf32>
    %32 = arith.mulf %18, %24 : vector<8x32xf32>
    %33 = arith.addf %31, %32 : vector<8x32xf32>
    %34 = arith.truncf %33 : vector<8x32xf32> to vector<8x32xbf16>
    %35 = arith.mulf %20, %25 : vector<8x16xf32>
    %36 = arith.mulf %21, %26 : vector<8x16xf32>
    %37 = arith.subf %35, %36 : vector<8x16xf32>
    %38 = arith.truncf %37 : vector<8x16xf32> to vector<8x16xbf16>
    %39 = arith.mulf %21, %25 : vector<8x16xf32>
    %40 = arith.mulf %20, %26 : vector<8x16xf32>
    %41 = arith.addf %39, %40 : vector<8x16xf32>
    %42 = arith.truncf %41 : vector<8x16xf32> to vector<8x16xbf16>
    %43 = arith.truncf %22 : vector<8x32xf32> to vector<8x32xbf16>
    %44 = tpu.iota {dimensions = array<i32: 0>} : vector<8x8xi32>
    %45 = tpu.iota {dimensions = array<i32: 1>} : vector<8x8xi32>
    %46 = arith.cmpi sle, %45, %44 : vector<8x8xi32>
    %47 = vector.extract_strided_slice %30 {offsets = [0, 0], sizes = [8, 8], strides = [1, 1]} : vector<8x32xbf16> to vector<8x8xbf16>
    %48 = vector.extract_strided_slice %38 {offsets = [0, 0], sizes = [8, 8], strides = [1, 1]} : vector<8x16xbf16> to vector<8x8xbf16>
    %cst_17 = arith.constant dense<0.000000e+00> : vector<8x8xf32>
    %49 = tpu.matmul %47, %48, %cst_17 {dimension_numbers = #tpu.dot_dimension_numbers<[1], [1], [0], [0], [0, 0, 1, 0], [], []>} : vector<8x8xbf16>, vector<8x8xbf16>, vector<8x8xf32> -> vector<8x8xf32>
    %50 = vector.extract_strided_slice %34 {offsets = [0, 0], sizes = [8, 8], strides = [1, 1]} : vector<8x32xbf16> to vector<8x8xbf16>
    %51 = vector.extract_strided_slice %42 {offsets = [0, 0], sizes = [8, 8], strides = [1, 1]} : vector<8x16xbf16> to vector<8x8xbf16>
    %cst_18 = arith.constant dense<0.000000e+00> : vector<8x8xf32>
    %52 = tpu.matmul %50, %51, %cst_18 {dimension_numbers = #tpu.dot_dimension_numbers<[1], [1], [0], [0], [0, 0, 1, 0], [], []>} : vector<8x8xbf16>, vector<8x8xbf16>, vector<8x8xf32> -> vector<8x8xf32>
    %53 = arith.addf %49, %52 : vector<8x8xf32>
    %cst_19 = arith.constant 2.500000e-01 : f32
    %54 = vector.broadcast %cst_19 : f32 to vector<8x8xf32>
    %55 = arith.mulf %53, %54 : vector<8x8xf32>
    %cst_20 = arith.constant 0xFF800000 : f32
    %56 = vector.broadcast %cst_20 : f32 to vector<8x8xf32>
    %57 = arith.select %46, %55, %56 : vector<8x8xi1>, vector<8x8xf32>
    %cst_21 = arith.constant dense<0xFF800000> : vector<8xf32>
    %58 = vector.multi_reduction <maximumf>, %57, %cst_21 [1] : vector<8x8xf32> to vector<8xf32>
    %59 = vector.shape_cast %58 : vector<8xf32> to vector<8x1xf32>
    %60 = vector.broadcast %59 : vector<8x1xf32> to vector<8x8xf32>
    %61 = arith.subf %57, %60 : vector<8x8xf32>
    %62 = math.exp %61 : vector<8x8xf32>
    %cst_22 = arith.constant dense<0.000000e+00> : vector<8xf32>
    %63 = vector.multi_reduction <add>, %62, %cst_22 [1] : vector<8x8xf32> to vector<8xf32>
    %64 = vector.shape_cast %63 : vector<8xf32> to vector<8x1xf32>
    %65 = tpu.reciprocal %64 {approx = true} : vector<8x1xf32> -> vector<8x1xf32>
    %66 = vector.broadcast %65 : vector<8x1xf32> to vector<8x8xf32>
    %67 = arith.mulf %62, %66 : vector<8x8xf32>
    %68 = arith.truncf %67 : vector<8x8xf32> to vector<8x8xbf16>
    %69 = vector.extract_strided_slice %43 {offsets = [0, 0], sizes = [8, 16], strides = [1, 1]} : vector<8x32xbf16> to vector<8x16xbf16>
    %cst_23 = arith.constant dense<0.000000e+00> : vector<8x16xf32>
    %70 = tpu.matmul %68, %69, %cst_23 {dimension_numbers = #tpu.dot_dimension_numbers<[1], [0], [0], [1], [0, 0, 1, 1], [], []>} : vector<8x8xbf16>, vector<8x16xbf16>, vector<8x16xf32> -> vector<8x16xf32>
    %71 = arith.truncf %70 : vector<8x16xf32> to vector<8x16xbf16>
    %c0_24 = arith.constant 0 : index
    %c0_25 = arith.constant 0 : index
    %c0_26 = arith.constant 0 : index
    %72 = vector.load %arg5[%c0_24, %c0_25, %c0_26] : memref<4x16x64xbf16, #tpu.memory_space<vmem>>, vector<1x16x64xbf16>
    %73 = vector.shape_cast %72 : vector<1x16x64xbf16> to vector<16x64xbf16>
    %cst_27 = arith.constant dense<0.000000e+00> : vector<8x64xf32>
    %74 = tpu.matmul %71, %73, %cst_27 {dimension_numbers = #tpu.dot_dimension_numbers<[1], [0], [0], [1], [0, 0, 1, 1], [], []>} : vector<8x16xbf16>, vector<16x64xbf16>, vector<8x64xf32> -> vector<8x64xf32>
    %75 = arith.addf %1, %74 : vector<8x64xf32>
    %76 = vector.extract_strided_slice %30 {offsets = [0, 8], sizes = [8, 8], strides = [1, 1]} : vector<8x32xbf16> to vector<8x8xbf16>
    %77 = vector.extract_strided_slice %38 {offsets = [0, 0], sizes = [8, 8], strides = [1, 1]} : vector<8x16xbf16> to vector<8x8xbf16>
    %cst_28 = arith.constant dense<0.000000e+00> : vector<8x8xf32>
    %78 = tpu.matmul %76, %77, %cst_28 {dimension_numbers = #tpu.dot_dimension_numbers<[1], [1], [0], [0], [0, 0, 1, 0], [], []>} : vector<8x8xbf16>, vector<8x8xbf16>, vector<8x8xf32> -> vector<8x8xf32>
    %79 = vector.extract_strided_slice %34 {offsets = [0, 8], sizes = [8, 8], strides = [1, 1]} : vector<8x32xbf16> to vector<8x8xbf16>
    %80 = vector.extract_strided_slice %42 {offsets = [0, 0], sizes = [8, 8], strides = [1, 1]} : vector<8x16xbf16> to vector<8x8xbf16>
    %cst_29 = arith.constant dense<0.000000e+00> : vector<8x8xf32>
    %81 = tpu.matmul %79, %80, %cst_29 {dimension_numbers = #tpu.dot_dimension_numbers<[1], [1], [0], [0], [0, 0, 1, 0], [], []>} : vector<8x8xbf16>, vector<8x8xbf16>, vector<8x8xf32> -> vector<8x8xf32>
    %82 = arith.addf %78, %81 : vector<8x8xf32>
    %cst_30 = arith.constant 2.500000e-01 : f32
    %83 = vector.broadcast %cst_30 : f32 to vector<8x8xf32>
    %84 = arith.mulf %82, %83 : vector<8x8xf32>
    %cst_31 = arith.constant 0xFF800000 : f32
    %85 = vector.broadcast %cst_31 : f32 to vector<8x8xf32>
    %86 = arith.select %46, %84, %85 : vector<8x8xi1>, vector<8x8xf32>
    %cst_32 = arith.constant dense<0xFF800000> : vector<8xf32>
    %87 = vector.multi_reduction <maximumf>, %86, %cst_32 [1] : vector<8x8xf32> to vector<8xf32>
    %88 = vector.shape_cast %87 : vector<8xf32> to vector<8x1xf32>
    %89 = vector.broadcast %88 : vector<8x1xf32> to vector<8x8xf32>
    %90 = arith.subf %86, %89 : vector<8x8xf32>
    %91 = math.exp %90 : vector<8x8xf32>
    %cst_33 = arith.constant dense<0.000000e+00> : vector<8xf32>
    %92 = vector.multi_reduction <add>, %91, %cst_33 [1] : vector<8x8xf32> to vector<8xf32>
    %93 = vector.shape_cast %92 : vector<8xf32> to vector<8x1xf32>
    %94 = tpu.reciprocal %93 {approx = true} : vector<8x1xf32> -> vector<8x1xf32>
    %95 = vector.broadcast %94 : vector<8x1xf32> to vector<8x8xf32>
    %96 = arith.mulf %91, %95 : vector<8x8xf32>
    %97 = arith.truncf %96 : vector<8x8xf32> to vector<8x8xbf16>
    %98 = vector.extract_strided_slice %43 {offsets = [0, 0], sizes = [8, 16], strides = [1, 1]} : vector<8x32xbf16> to vector<8x16xbf16>
    %cst_34 = arith.constant dense<0.000000e+00> : vector<8x16xf32>
    %99 = tpu.matmul %97, %98, %cst_34 {dimension_numbers = #tpu.dot_dimension_numbers<[1], [0], [0], [1], [0, 0, 1, 1], [], []>} : vector<8x8xbf16>, vector<8x16xbf16>, vector<8x16xf32> -> vector<8x16xf32>
    %100 = arith.truncf %99 : vector<8x16xf32> to vector<8x16xbf16>
    %c1 = arith.constant 1 : index
    %c0_35 = arith.constant 0 : index
    %c0_36 = arith.constant 0 : index
    %101 = vector.load %arg5[%c1, %c0_35, %c0_36] : memref<4x16x64xbf16, #tpu.memory_space<vmem>>, vector<1x16x64xbf16>
    %102 = vector.shape_cast %101 : vector<1x16x64xbf16> to vector<16x64xbf16>
    %cst_37 = arith.constant dense<0.000000e+00> : vector<8x64xf32>
    %103 = tpu.matmul %100, %102, %cst_37 {dimension_numbers = #tpu.dot_dimension_numbers<[1], [0], [0], [1], [0, 0, 1, 1], [], []>} : vector<8x16xbf16>, vector<16x64xbf16>, vector<8x64xf32> -> vector<8x64xf32>
    %104 = arith.addf %75, %103 : vector<8x64xf32>
    %105 = vector.extract_strided_slice %30 {offsets = [0, 16], sizes = [8, 8], strides = [1, 1]} : vector<8x32xbf16> to vector<8x8xbf16>
    %106 = vector.extract_strided_slice %38 {offsets = [0, 8], sizes = [8, 8], strides = [1, 1]} : vector<8x16xbf16> to vector<8x8xbf16>
    %cst_38 = arith.constant dense<0.000000e+00> : vector<8x8xf32>
    %107 = tpu.matmul %105, %106, %cst_38 {dimension_numbers = #tpu.dot_dimension_numbers<[1], [1], [0], [0], [0, 0, 1, 0], [], []>} : vector<8x8xbf16>, vector<8x8xbf16>, vector<8x8xf32> -> vector<8x8xf32>
    %108 = vector.extract_strided_slice %34 {offsets = [0, 16], sizes = [8, 8], strides = [1, 1]} : vector<8x32xbf16> to vector<8x8xbf16>
    %109 = vector.extract_strided_slice %42 {offsets = [0, 8], sizes = [8, 8], strides = [1, 1]} : vector<8x16xbf16> to vector<8x8xbf16>
    %cst_39 = arith.constant dense<0.000000e+00> : vector<8x8xf32>
    %110 = tpu.matmul %108, %109, %cst_39 {dimension_numbers = #tpu.dot_dimension_numbers<[1], [1], [0], [0], [0, 0, 1, 0], [], []>} : vector<8x8xbf16>, vector<8x8xbf16>, vector<8x8xf32> -> vector<8x8xf32>
    %111 = arith.addf %107, %110 : vector<8x8xf32>
    %cst_40 = arith.constant 2.500000e-01 : f32
    %112 = vector.broadcast %cst_40 : f32 to vector<8x8xf32>
    %113 = arith.mulf %111, %112 : vector<8x8xf32>
    %cst_41 = arith.constant 0xFF800000 : f32
    %114 = vector.broadcast %cst_41 : f32 to vector<8x8xf32>
    %115 = arith.select %46, %113, %114 : vector<8x8xi1>, vector<8x8xf32>
    %cst_42 = arith.constant dense<0xFF800000> : vector<8xf32>
    %116 = vector.multi_reduction <maximumf>, %115, %cst_42 [1] : vector<8x8xf32> to vector<8xf32>
    %117 = vector.shape_cast %116 : vector<8xf32> to vector<8x1xf32>
    %118 = vector.broadcast %117 : vector<8x1xf32> to vector<8x8xf32>
    %119 = arith.subf %115, %118 : vector<8x8xf32>
    %120 = math.exp %119 : vector<8x8xf32>
    %cst_43 = arith.constant dense<0.000000e+00> : vector<8xf32>
    %121 = vector.multi_reduction <add>, %120, %cst_43 [1] : vector<8x8xf32> to vector<8xf32>
    %122 = vector.shape_cast %121 : vector<8xf32> to vector<8x1xf32>
    %123 = tpu.reciprocal %122 {approx = true} : vector<8x1xf32> -> vector<8x1xf32>
    %124 = vector.broadcast %123 : vector<8x1xf32> to vector<8x8xf32>
    %125 = arith.mulf %120, %124 : vector<8x8xf32>
    %126 = arith.truncf %125 : vector<8x8xf32> to vector<8x8xbf16>
    %127 = vector.extract_strided_slice %43 {offsets = [0, 16], sizes = [8, 16], strides = [1, 1]} : vector<8x32xbf16> to vector<8x16xbf16>
    %cst_44 = arith.constant dense<0.000000e+00> : vector<8x16xf32>
    %128 = tpu.matmul %126, %127, %cst_44 {dimension_numbers = #tpu.dot_dimension_numbers<[1], [0], [0], [1], [0, 0, 1, 1], [], []>} : vector<8x8xbf16>, vector<8x16xbf16>, vector<8x16xf32> -> vector<8x16xf32>
    %129 = arith.truncf %128 : vector<8x16xf32> to vector<8x16xbf16>
    %c2 = arith.constant 2 : index
    %c0_45 = arith.constant 0 : index
    %c0_46 = arith.constant 0 : index
    %130 = vector.load %arg5[%c2, %c0_45, %c0_46] : memref<4x16x64xbf16, #tpu.memory_space<vmem>>, vector<1x16x64xbf16>
    %131 = vector.shape_cast %130 : vector<1x16x64xbf16> to vector<16x64xbf16>
    %cst_47 = arith.constant dense<0.000000e+00> : vector<8x64xf32>
    %132 = tpu.matmul %129, %131, %cst_47 {dimension_numbers = #tpu.dot_dimension_numbers<[1], [0], [0], [1], [0, 0, 1, 1], [], []>} : vector<8x16xbf16>, vector<16x64xbf16>, vector<8x64xf32> -> vector<8x64xf32>
    %133 = arith.addf %104, %132 : vector<8x64xf32>
    %134 = vector.extract_strided_slice %30 {offsets = [0, 24], sizes = [8, 8], strides = [1, 1]} : vector<8x32xbf16> to vector<8x8xbf16>
    %135 = vector.extract_strided_slice %38 {offsets = [0, 8], sizes = [8, 8], strides = [1, 1]} : vector<8x16xbf16> to vector<8x8xbf16>
    %cst_48 = arith.constant dense<0.000000e+00> : vector<8x8xf32>
    %136 = tpu.matmul %134, %135, %cst_48 {dimension_numbers = #tpu.dot_dimension_numbers<[1], [1], [0], [0], [0, 0, 1, 0], [], []>} : vector<8x8xbf16>, vector<8x8xbf16>, vector<8x8xf32> -> vector<8x8xf32>
    %137 = vector.extract_strided_slice %34 {offsets = [0, 24], sizes = [8, 8], strides = [1, 1]} : vector<8x32xbf16> to vector<8x8xbf16>
    %138 = vector.extract_strided_slice %42 {offsets = [0, 8], sizes = [8, 8], strides = [1, 1]} : vector<8x16xbf16> to vector<8x8xbf16>
    %cst_49 = arith.constant dense<0.000000e+00> : vector<8x8xf32>
    %139 = tpu.matmul %137, %138, %cst_49 {dimension_numbers = #tpu.dot_dimension_numbers<[1], [1], [0], [0], [0, 0, 1, 0], [], []>} : vector<8x8xbf16>, vector<8x8xbf16>, vector<8x8xf32> -> vector<8x8xf32>
    %140 = arith.addf %136, %139 : vector<8x8xf32>
    %cst_50 = arith.constant 2.500000e-01 : f32
    %141 = vector.broadcast %cst_50 : f32 to vector<8x8xf32>
    %142 = arith.mulf %140, %141 : vector<8x8xf32>
    %cst_51 = arith.constant 0xFF800000 : f32
    %143 = vector.broadcast %cst_51 : f32 to vector<8x8xf32>
    %144 = arith.select %46, %142, %143 : vector<8x8xi1>, vector<8x8xf32>
    %cst_52 = arith.constant dense<0xFF800000> : vector<8xf32>
    %145 = vector.multi_reduction <maximumf>, %144, %cst_52 [1] : vector<8x8xf32> to vector<8xf32>
    %146 = vector.shape_cast %145 : vector<8xf32> to vector<8x1xf32>
    %147 = vector.broadcast %146 : vector<8x1xf32> to vector<8x8xf32>
    %148 = arith.subf %144, %147 : vector<8x8xf32>
    %149 = math.exp %148 : vector<8x8xf32>
    %cst_53 = arith.constant dense<0.000000e+00> : vector<8xf32>
    %150 = vector.multi_reduction <add>, %149, %cst_53 [1] : vector<8x8xf32> to vector<8xf32>
    %151 = vector.shape_cast %150 : vector<8xf32> to vector<8x1xf32>
    %152 = tpu.reciprocal %151 {approx = true} : vector<8x1xf32> -> vector<8x1xf32>
    %153 = vector.broadcast %152 : vector<8x1xf32> to vector<8x8xf32>
    %154 = arith.mulf %149, %153 : vector<8x8xf32>
    %155 = arith.truncf %154 : vector<8x8xf32> to vector<8x8xbf16>
    %156 = vector.extract_strided_slice %43 {offsets = [0, 16], sizes = [8, 16], strides = [1, 1]} : vector<8x32xbf16> to vector<8x16xbf16>
    %cst_54 = arith.constant dense<0.000000e+00> : vector<8x16xf32>
    %157 = tpu.matmul %155, %156, %cst_54 {dimension_numbers = #tpu.dot_dimension_numbers<[1], [0], [0], [1], [0, 0, 1, 1], [], []>} : vector<8x8xbf16>, vector<8x16xbf16>, vector<8x16xf32> -> vector<8x16xf32>
    %158 = arith.truncf %157 : vector<8x16xf32> to vector<8x16xbf16>
    %c3 = arith.constant 3 : index
    %c0_55 = arith.constant 0 : index
    %c0_56 = arith.constant 0 : index
    %159 = vector.load %arg5[%c3, %c0_55, %c0_56] : memref<4x16x64xbf16, #tpu.memory_space<vmem>>, vector<1x16x64xbf16>
    %160 = vector.shape_cast %159 : vector<1x16x64xbf16> to vector<16x64xbf16>
    %cst_57 = arith.constant dense<0.000000e+00> : vector<8x64xf32>
    %161 = tpu.matmul %158, %160, %cst_57 {dimension_numbers = #tpu.dot_dimension_numbers<[1], [0], [0], [1], [0, 0, 1, 1], [], []>} : vector<8x16xbf16>, vector<16x64xbf16>, vector<8x64xf32> -> vector<8x64xf32>
    %162 = arith.addf %133, %161 : vector<8x64xf32>
    %163 = arith.mulf %162, %162 : vector<8x64xf32>
    %cst_58 = arith.constant dense<0.000000e+00> : vector<8xf32>
    %164 = vector.multi_reduction <add>, %163, %cst_58 [1] : vector<8x64xf32> to vector<8xf32>
    %165 = vector.shape_cast %164 : vector<8xf32> to vector<8x1xf32>
    %cst_59 = arith.constant 6.400000e+01 : f32
    %166 = vector.broadcast %cst_59 : f32 to vector<8x1xf32>
    %167 = arith.divf %165, %166 : vector<8x1xf32>
    %cst_60 = arith.constant 9.99999974E-6 : f32
    %168 = vector.broadcast %cst_60 : f32 to vector<8x1xf32>
    %169 = arith.addf %167, %168 : vector<8x1xf32>
    %170 = math.rsqrt %169 : vector<8x1xf32>
    %171 = vector.broadcast %170 : vector<8x1xf32> to vector<8x64xf32>
    %172 = arith.mulf %162, %171 : vector<8x64xf32>
    %c0_61 = arith.constant 0 : index
    %c0_62 = arith.constant 0 : index
    %173 = vector.load %arg3[%c0_61, %c0_62] : memref<1x64xf32, #tpu.memory_space<vmem>>, vector<1x64xf32>
    %174 = vector.broadcast %173 : vector<1x64xf32> to vector<8x64xf32>
    %175 = arith.mulf %172, %174 : vector<8x64xf32>
    %176 = arith.truncf %175 : vector<8x64xf32> to vector<8x64xbf16>
    %c0_63 = arith.constant 0 : index
    %c0_64 = arith.constant 0 : index
    %177 = vector.load %arg6[%c0_63, %c0_64] : memref<64x384xbf16, #tpu.memory_space<vmem>>, vector<64x384xbf16>
    %cst_65 = arith.constant dense<0.000000e+00> : vector<8x384xf32>
    %178 = tpu.matmul %176, %177, %cst_65 {dimension_numbers = #tpu.dot_dimension_numbers<[1], [0], [0], [1], [0, 0, 1, 1], [], []>} : vector<8x64xbf16>, vector<64x384xbf16>, vector<8x384xf32> -> vector<8x384xf32>
    %179 = vector.extract_strided_slice %178 {offsets = [0, 0], sizes = [8, 192], strides = [1, 1]} : vector<8x384xf32> to vector<8x192xf32>
    %180 = vector.extract_strided_slice %178 {offsets = [0, 192], sizes = [8, 192], strides = [1, 1]} : vector<8x384xf32> to vector<8x192xf32>
    %181 = arith.negf %179 : vector<8x192xf32>
    %182 = math.exp %181 : vector<8x192xf32>
    %cst_66 = arith.constant 1.000000e+00 : f32
    %183 = vector.broadcast %cst_66 : f32 to vector<8x192xf32>
    %184 = arith.addf %183, %182 : vector<8x192xf32>
    %185 = arith.divf %183, %184 : vector<8x192xf32>
    %186 = arith.mulf %179, %185 : vector<8x192xf32>
    %187 = arith.mulf %186, %180 : vector<8x192xf32>
    %188 = arith.truncf %187 : vector<8x192xf32> to vector<8x192xbf16>
    %c0_67 = arith.constant 0 : index
    %c0_68 = arith.constant 0 : index
    %189 = vector.load %arg7[%c0_67, %c0_68] : memref<192x64xbf16, #tpu.memory_space<vmem>>, vector<192x64xbf16>
    %cst_69 = arith.constant dense<0.000000e+00> : vector<8x64xf32>
    %190 = tpu.matmul %188, %189, %cst_69 {dimension_numbers = #tpu.dot_dimension_numbers<[1], [0], [0], [1], [0, 0, 1, 1], [], []>} : vector<8x192xbf16>, vector<192x64xbf16>, vector<8x64xf32> -> vector<8x64xf32>
    %191 = arith.addf %162, %190 : vector<8x64xf32>
    %c0_70 = arith.constant 0 : index
    %c0_71 = arith.constant 0 : index
    %c0_72 = arith.constant 0 : index
    %192 = vector.load %arg12[%c0_70, %c0_71, %c0_72] : memref<1x8x64xf32, #tpu.memory_space<vmem>>, vector<1x8x64xf32>
    %193 = vector.shape_cast %192 : vector<1x8x64xf32> to vector<8x64xf32>
    %194 = vector.shape_cast %191 : vector<8x64xf32> to vector<1x8x64xf32>
    tpu.vector_store %arg12[%c0_70, %c0_71, %c0_72], %194 {strides = array<i32>} : memref<1x8x64xf32, #tpu.memory_space<vmem>>, vector<1x8x64xf32>,
    return
  }
  func.func @transform_0(%arg0: i32) -> (i32, i32, i32) {
    %c0_i32 = arith.constant 0 : i32
    %c0_i32_0 = arith.constant 0 : i32
    %c0_i32_1 = arith.constant 0 : i32
    return %arg0, %c0_i32, %c0_i32_0 : i32, i32, i32
  }
  func.func @transform_1(%arg0: i32) -> (i32, i32) {
    %c0_i32 = arith.constant 0 : i32
    %c0_i32_0 = arith.constant 0 : i32
    %c0_i32_1 = arith.constant 0 : i32
    return %c0_i32, %c0_i32_0 : i32, i32
  }
  func.func @transform_2(%arg0: i32) -> (i32, i32) {
    %c0_i32 = arith.constant 0 : i32
    %c0_i32_0 = arith.constant 0 : i32
    %c0_i32_1 = arith.constant 0 : i32
    return %c0_i32, %c0_i32_0 : i32, i32
  }
  func.func @transform_3(%arg0: i32) -> (i32, i32) {
    %c0_i32 = arith.constant 0 : i32
    %c0_i32_0 = arith.constant 0 : i32
    %c0_i32_1 = arith.constant 0 : i32
    return %c0_i32, %c0_i32_0 : i32, i32
  }
  func.func @transform_4(%arg0: i32) -> (i32, i32, i32) {
    %c0_i32 = arith.constant 0 : i32
    %c0_i32_0 = arith.constant 0 : i32
    %c0_i32_1 = arith.constant 0 : i32
    %c0_i32_2 = arith.constant 0 : i32
    return %c0_i32, %c0_i32_0, %c0_i32_1 : i32, i32, i32
  }
  func.func @transform_5(%arg0: i32) -> (i32, i32) {
    %c0_i32 = arith.constant 0 : i32
    %c0_i32_0 = arith.constant 0 : i32
    %c0_i32_1 = arith.constant 0 : i32
    return %c0_i32, %c0_i32_0 : i32, i32
  }
  func.func @transform_6(%arg0: i32) -> (i32, i32) {
    %c0_i32 = arith.constant 0 : i32
    %c0_i32_0 = arith.constant 0 : i32
    %c0_i32_1 = arith.constant 0 : i32
    return %c0_i32, %c0_i32_0 : i32, i32
  }
  func.func @transform_7(%arg0: i32) -> (i32, i32) {
    %c0_i32 = arith.constant 0 : i32
    %c0_i32_0 = arith.constant 0 : i32
    %c0_i32_1 = arith.constant 0 : i32
    return %c0_i32, %c0_i32_0 : i32, i32
  }
  func.func @transform_8(%arg0: i32) -> (i32, i32) {
    %c0_i32 = arith.constant 0 : i32
    %c0_i32_0 = arith.constant 0 : i32
    %c0_i32_1 = arith.constant 0 : i32
    return %c0_i32, %c0_i32_0 : i32, i32
  }
  func.func @transform_9(%arg0: i32) -> (i32, i32) {
    %c0_i32 = arith.constant 0 : i32
    %c0_i32_0 = arith.constant 0 : i32
    %c0_i32_1 = arith.constant 0 : i32
    return %c0_i32, %c0_i32_0 : i32, i32
  }
  func.func @transform_10(%arg0: i32) -> (i32, i32) {
    %c0_i32 = arith.constant 0 : i32
    %c0_i32_0 = arith.constant 0 : i32
    %c0_i32_1 = arith.constant 0 : i32
    return %c0_i32, %c0_i32_0 : i32, i32
  }
  func.func @transform_11(%arg0: i32) -> (i32, i32, i32) {
    %c0_i32 = arith.constant 0 : i32
    %c0_i32_0 = arith.constant 0 : i32
    %c0_i32_1 = arith.constant 0 : i32
    return %arg0, %c0_i32, %c0_i32_0 : i32, i32, i32
  }
}

</mosaic_0001>

<bundles_post_ra>
// kernel: tpu_custom_call.1
= control target key start
LH: loop header
LB: loop body
LE: loop exit
PB: predicated region body
PF: predicated region fallthrough
CT: control target
= control target key end

     0   :  { %s3135_s0 = inlined_call_operand.hbm [shape: f32[2,8,64], index: 0, kind: input, shape index: {}]   ;;  %s3136_s1 = inlined_call_operand.hbm [shape: f32[1,64], index: 1, kind: input, shape index: {}]   ;;  %s3137_s2 = inlined_call_operand.hbm [shape: f32[1,64], index: 2, kind: input, shape index: {}]   ;;  %s3138_s3 = inlined_call_operand.vmem [shape: bf16[64,128], index: 3, kind: input, shape index: {}]   ;;  %s3139_s4 = inlined_call_operand.vmem [shape: bf16[4,16,64], index: 4, kind: input, shape index: {}]   ;;  %s3140_s5 = inlined_call_operand.vmem [shape: bf16[64,384], index: 5, kind: input, shape index: {}]   ;;  %s3141_s6 = inlined_call_operand.vmem [shape: bf16[192,64], index: 6, kind: input, shape index: {}]   ;;  %s3142_s7 = inlined_call_operand.vmem [shape: f32[8,32], index: 7, kind: input, shape index: {}]   ;;  %s3143_s8 = inlined_call_operand.hbm [shape: f32[8,32], index: 8, kind: input, shape index: {}]   ;;  %s3144_s9 = inlined_call_operand.vmem [shape: f32[8,16], index: 9, kind: input, shape index: {}]   ;;  %s3145_s10 = inlined_call_operand.hbm [shape: f32[8,16], index: 10, kind: input, shape index: {}]   ;;  %s3146_s11 = inlined_call_operand.hbm [shape: f32[2,8,64], index: 11, kind: output, shape index: {}]  }
   0x1   :  { %3152 = sst [smem:[#allocation18_spill]] %s3136_s1 }
   0x2   :  { %3153 = sst [smem:[#allocation19_spill]] %s3137_s2 }
   0x3   :  { %3154 = sst [smem:[#allocation20_spill]] %s3143_s8 }
   0x4   :  { %3155 = sst [smem:[#allocation21_spill]] %s3145_s10 }
   0x5   :  { %16 = vsyncpa [#allocation3], 0 }
   0x6   :  { %18 = vsyncpa [#allocation3 + $0x1], 0 }
   0x7   :  { %19 = vsyncpa [#allocation6], 0 }
   0x8   :  { %20 = vsyncpa [#allocation9], 0 }
   0x9   :  { %21 = vsyncpa [#allocation4], 0 }
   0xa   :  { %23 = vsyncpa [#allocation4 + $0x1], 0  ;;  %s2621_s17 = smov 0   ;;  %s2623_s18 = smov 0  }
   0xb   :  { %s2625_s19 = smov 0   ;;  %s2627_s20 = smov 0  }
   0xc LB: > { %3156 = sst [smem:[#allocation16_spill]] %s2533_s19  ;;  %s2539_s21 = smov [#allocation5]   ;;  %s2537_s20 = sphi %s2627_s20, %s3183_s20   ;;  %s2533_s19 = sphi %s2625_s19, %s3180_s19   ;;  %s2529_s18 = sphi %s2623_s18, %s3182_s18   ;;  %s2525_s17 = sphi %s2621_s17, %s3181_s17  }
   0xd   : > { %s309_s22 = sshll.u32 %s2539_s21, 4  ;;  %s2642_s23 = sadd.s32 4294967295, %s2537_s20   ;;  %s310_s22 = int_to_ptr.vmem [resolvable:$true] %s309_s22 }
   0xe   : > { %p1923_p0 = scmp.ge.s32.totalorder %s2537_s20, 1  ;;  %p3147_p1 = scmp.eq.s32.totalorder %s2642_s23, 0 }
   0xf   : > { %p296_p2 = scmp.lt.s32.totalorder %s2537_s20, 3  ;;  %s2540_s25 = smov [#allocation8]  }
  0x10   : > { %s346_s26 = sshll.u32 %s2540_s25, 4  ;;  %s2541_s27 = smov [#allocation7]   ;;  %s347_s26 = int_to_ptr.vmem [resolvable:$true] %s346_s26 }
  0x11   : > { %p2647_p3 = pnand %p1923_p0, %p296_p2  ;;  %s320_s28 = sshll.u32 %s2541_s27, 4  ;;  %s2660_s28 = int_to_ptr.vmem [resolvable:$true] %s320_s28 }
  0x12   : > { %s2542_s30 = smov [#allocation10]   ;;  %s2344_s13 = scalar_lea.vmem %s310_s22, 16 }
  0x13   : > { %s3157_s24 = scalar_select %p2647_p3, 1, 0 }
  0x14   : > { %p2186_p5 = pneg %p2647_p3  ;;  %s2662_s12 = sshll.u32 %s2542_s30, 4  ;;  %s361_s12 = int_to_ptr.vmem [resolvable:$true] %s2662_s12 }
  0x15   : > { %p2345_p8 = scmp.ne.s32.totalorder %s310_s22, %s2344_s13  ;;  %s2351_s14 = scalar_lea.vmem %s310_s22, 32 }
  0x16   : > { %p2656_p6 = pnand %p2186_p5, %p3147_p1  ;;  %p2352_p11 = scmp.lt.s32.totalorder %s310_s22, %s310_s22 }
  0x17   : > { %p2353_p12 = scmp.lt.s32.totalorder %s2351_s14, %s2344_s13 }
  0x18   : > { %p2335_p7 = pneg %p2656_p6 }
  0x19   : > { %p2354_p13 = por %p2353_p12, %p2352_p11 }
  0x1a   : > { %p2347_p9 = pnand %p2345_p8, %p2335_p7 }
  0x1c   : > { %p2348_p10 = pneg %p2347_p9 }
  0x1e   : > { %p2355_p0 = pnand %p2354_p13, %p2348_p10 }
  0x20   : > { %2358 = shalt.err (!%p2355_p0)
}
  0x21   : > { %s3159_s1 = sld [smem:[#allocation18_spill]]  ;;  %s2370_s21 = scalar_lea.vmem %s347_s26, 128 }
  0x22   : > { %p2371_p2 = scmp.ne.s32.totalorder %s347_s26, %s2370_s21  ;;  %p2378_p9 = scmp.lt.s32.totalorder %s347_s26, %s347_s26 }
  0x23   : > { %p2379_p4 = scmp.lt.s32.totalorder %s2370_s21, %s2370_s21 }
  0x24   : > { %p2373_p5 = pnand %p2371_p2, %p2335_p7 }
  0x25   : > { %p2380_p1 = por %p2379_p4, %p2378_p9 }
  0x26   : > { %p2374_p8 = pneg %p2373_p5 }
  0x27   : > { %2189 = dma.hbm_to_vmem [thread:$0]  (!%p2656_p6), %s3159_s1, 16, %s310_s22, [#allocation6]  }
  0x28   : > { %p2381_p3 = pnand %p2380_p1, %p2374_p8 }
  0x2a   : > { %2384 = shalt.err (!%p2381_p3)
}
  0x2b   : > { %s3160_s8 = sld [smem:[#allocation20_spill]]  ;;  %s2396_s22 = scalar_lea.vmem %s2660_s28, 16 }
  0x2c   : > { %p2397_p10 = scmp.ne.s32.totalorder %s2660_s28, %s2396_s22  ;;  %s2403_s30 = scalar_lea.vmem %s2660_s28, 32 }
  0x2d   : > { %p2404_p1 = scmp.lt.s32.totalorder %s2660_s28, %s2660_s28  ;;  %p2405_p3 = scmp.lt.s32.totalorder %s2403_s30, %s2396_s22 }
  0x2e   : > { %p2399_p11 = pnand %p2397_p10, %p2335_p7 }
  0x2f   : > { %p2406_p4 = por %p2405_p3, %p2404_p1 }
  0x30   : > { %p2400_p12 = pneg %p2399_p11 }
  0x31   : > { %2195 = dma.hbm_to_vmem [thread:$0]  (!%p2656_p6), %s3160_s8, 128, %s347_s26, [#allocation9]  }
  0x32   : > { %p2407_p13 = pnand %p2406_p4, %p2400_p12 }
  0x34   : > { %2410 = shalt.err (!%p2407_p13)
}
  0x35   : > { %s3161_s2 = sld [smem:[#allocation19_spill]]  ;;  %s2422_s26 = scalar_lea.vmem %s361_s12, 128 }
  0x36   : > { %p2423_p0 = scmp.ne.s32.totalorder %s361_s12, %s2422_s26  ;;  %p2430_p8 = scmp.lt.s32.totalorder %s361_s12, %s361_s12 }
  0x37   : > { %p2431_p9 = scmp.lt.s32.totalorder %s2422_s26, %s2422_s26 }
  0x38   : > { %p2425_p2 = pnand %p2423_p0, %p2335_p7 }
  0x39   : > { %p2432_p10 = por %p2431_p9, %p2430_p8 }
  0x3a   : > { %p2426_p5 = pneg %p2425_p2 }
  0x3b   : > { %2192 = dma.hbm_to_vmem [thread:$0]  (!%p2656_p6), %s3161_s2, 16, %s2660_s28, [#allocation6]  }
  0x3c   : > { %p2433_p11 = pnand %p2432_p10, %p2426_p5 }
  0x3e   : > { %2436 = shalt.err (!%p2433_p11)
}
  0x3f   : > { %s3162_s10 = sld [smem:[#allocation21_spill]]  ;;  %s1922_s28 = sadd.s32 4294967294, %s2537_s20  }
  0x40   : > { %s2707_s29 = sadd.s32 1, %s2537_s20   ;;  %s36_s25 = sadd.s32 1, %s2533_s19 }
  0x41   : > { %s33_s21 = ssub.s32 %s2537_s20, %s2707_s29  ;;  %p43_p12 = scmp.ne.s32.totalorder %s2533_s19, %s2529_s18 }
  0x42   : > { %p34_p7 = scmp.eq.s32.totalorder %s33_s21, 0  ;;  %p44_p1 = scmp.eq.s32.totalorder %s2537_s20, 0 }
  0x43   : > { %p49_p3 = scmp.ne.s32.totalorder %s2529_s18, %s2525_s17  ;;  %p3165_p13 = scmp.eq.s32.totalorder %s2642_s23, 0 }
  0x44   : > { %s2718_s27 = scalar_select %p34_p7, %s2533_s19, %s36_s25  }
  0x45   : > { %2198 = dma.hbm_to_vmem [thread:$0]  (!%p2656_p6), %s3162_s10, 128, %s361_s12, [#allocation9]  }
  0x46   : > { %3163 = sst [smem:[#allocation17_spill]] %s2718_s27  ;;  %p2720_p4 = por %p44_p1, %p43_p12 }
  0x47   : > { %p2726_p6 = por %p3165_p13, %p49_p3  ;;  %p283_p0 = scmp.eq.s32.totalorder %s2642_s23, 1 }
  0x48   : > { %p289_p2 = scmp.eq.s32.totalorder %s1922_s28, 1  ;;  %p2211_p5 = scmp.lt.s32.totalorder %s2537_s20, 2 }
  0x49   : > { %s3166_s12 = scalar_select %p2726_p6, 1, 0 }
  0x4a   : > { %s371_s30 = sand.u32 1, %s2533_s19   ;;  %p2733_p8 = por %p283_p0, %p43_p12 }
  0x4b   : > { %p2737_p9 = por %p289_p2, %p49_p3  ;;  %s1929_s26 = sshll.u32 %s371_s30, 3 }
  0x4c   : > { %s3167_s13 = scalar_select %p2733_p8, 1, 0 }
  0x4d   : > { %s3168_s14 = scalar_select %p2737_p9, 1, 0 }
  0x4e   : > { %s1930_s15 = sshll.u32 %s2537_s20, 7  ;;  %s375_s28 = scalar_lea.vmem [#allocation2], %s1929_s26 }
  0x4f   : > { %s2745_s25 = scalar_lea.hbm %s3135_s0, %s1930_s15  ;;  %s382_s1 = sshll.u32 %s375_s28, 4  ;;  %s383_s1 = int_to_ptr.vmem [resolvable:$true] %s382_s1 }
  0x50   : > { %p2749_p10 = pnand %p2211_p5, %p2720_p4  ;;  %s372_s8 = scalar_lea.sflag [#allocation3], %s371_s30 }
  0x51   : > { %s2437_s10 = scalar_lea.hbm %s2745_s25, 128  ;;  %s2442_s21 = scalar_lea.hbm %s3135_s0, 256 }
  0x52   : > { %p2438_p11 = scmp.ne.s32.totalorder %s2745_s25, %s2437_s10  ;;  %p2439_p7 = pneg %p2749_p10 }
  0x53   : > { %p2443_p3 = scmp.lt.s32.totalorder %s2745_s25, %s3135_s0  ;;  %p2444_p4 = scmp.lt.s32.totalorder %s2442_s21, %s2437_s10 }
  0x54   : > { %p2440_p12 = pnand %p2439_p7, %p2438_p11 }
  0x55   : > { %p2445_p13 = por %p2444_p4, %p2443_p3 }
  0x56   : > { %p2441_p1 = pneg %p2440_p12 }
  0x58   : > { %p2446_p0 = pnand %p2445_p13, %p2441_p1 }
  0x5a   : > { %2449 = shalt.err (!%p2446_p0)
}
  0x5b   : > { %s2450_s22 = scalar_lea.vmem %s383_s1, 128  ;;  %s2543_s30 = smov [#allocation2]  }
  0x5c   : > { %p2451_p2 = scmp.ne.s32.totalorder %s383_s1, %s2450_s22  ;;  %s2455_s27 = sshll.u32 %s2543_s30, 4  ;;  %s2456_s27 = int_to_ptr.vmem [resolvable:$false] %s2455_s27 }
  0x5d   : > { %s2457_s19 = scalar_lea.vmem %s2456_s27, 256  ;;  %p2458_p11 = scmp.lt.s32.totalorder %s383_s1, %s2456_s27 }
  0x5e   : > { %p2453_p5 = pnand %p2451_p2, %p2439_p7  ;;  %p2459_p12 = scmp.lt.s32.totalorder %s2457_s19, %s2450_s22 }
  0x60   : > { %p2454_p9 = pneg %p2453_p5  ;;  %p2460_p8 = por %p2459_p12, %p2458_p11 }
  0x62   : > { %p2461_p6 = pnand %p2460_p8, %p2454_p9 }
  0x64   : > { %2464 = shalt.err (!%p2461_p6)
}
  0x65   : > { %2202 = dma.hbm_to_vmem [thread:$0]  (!%p2749_p10), %s2745_s25, 128, %s383_s1, %s372_s8  }
  0x66   : > { %p3170_p1 = scmp.ne.s32.totalorder %s3157_s24, 0 }
  0x67   : > { %s2770_s10 = sand.u32 (!%p3170_p1), 1, %s2529_s18   ;;  %p3171_p8 = scmp.ne.s32.totalorder (!%p3170_p1), %s3166_s12, 0 }
  0x68   : > { %391 = sbr.rel (%p3170_p1) target bundleno = 4463 (0x116f), region = 64  ;;  %s1932_s15 = sshll.u32 (!%p3170_p1), %s2770_s10, 3 }
  0x69   : > { %s394_s27 = scalar_lea.sflag (!%p3170_p1), [#allocation3], %s2770_s10  ;;  %s397_s19 = scalar_lea.vmem (!%p3170_p1), [#allocation2], %s1932_s15 }
  0x6d   : > { %2508 = dma.done.wait (%p3171_p8), %s394_s27, 128  }
  0x6e   : > { %2510 = vsyncadd (%p3171_p8), %s394_s27, 4294967168  ;;  %p3172_p6 = scmp.eq.s32.totalorder %s2642_s23, 0 }
  0x70   : > { %2512 = dma.done.wait (%p3172_p6), [#allocation6], 32   ;;  %p3173_p9 = pmov %p3172_p6 }
  0x71   : > { %p3174_p10 = pmov %p3172_p6 }
  0x72   : > { %2514 = vsyncadd (%p3173_p9), [#allocation6], 4294967264 }
  0x73   : > { %2516 = dma.done.wait (%p3174_p10), [#allocation9], 256   ;;  %p3175_p7 = pmov %p3172_p6 }
  0x74   : > { %v2788_v0 = vld [vmem:[%s397_s19] sm:$0xff]  ;;  %vm455_vm0 = vcmask 523264   ;;  %v2269_v3 = vld [vmem:[%s3138_s3 + $0x18] sm:$0xff]   ;;  %v2544_v4 = vmov 0.0   ;;  %vm2545_vm1 = vmmov 0   ;;  %v2270_v5 = vld [vmem:[%s3138_s3 + $0x10] sm:$0xff]   ;;  %v607_v57 = vlaneseq }
  0x75   : > { %2518 = vsyncadd (%p3175_p7), [#allocation9], 4294967040  ;;  %v454_v1 = vmul.f32 %v2788_v0, %v2788_v0  ;;  %2046 = vmatprep.subr.bf16.mxu1 %v2544_v4  ;;  %2054 = vmatprep.mubr.msk.bf16.mxu1 %vm2545_vm1, %v2544_v4  ;;  %v2271_v6 = vld [vmem:[%s3138_s3 + $0x8] sm:$0xff]   ;;  %v2272_v7 = vld [vmem:[%s3138_s3] sm:$0xff]   ;;  %s2546_s26 = smov 80   ;;  %s2547_s30 = smov 64  }
  0x76   : > { %2047 = vmatpush3.bf16.msra.mxu1 %v2269_v3  ;;  %2082 = vmatprep.subr.bf16.mxu0 %v2544_v4  ;;  %v551_v8 = vld [vmem:[#allocation10] sm:$0xff]  ;;  %v549_v10 = vld [vmem:[#allocation8] sm:$0xff]  ;;  %s2548_s1 = smov 32   ;;  %v1938_v16 = vld [vmem:[#allocation5] ss:$0 sm:$0xff]  ;;  %s2549_s2 = smov 16  }
  0x77   : > { %v456_v2 = vsel %vm455_vm0, %v454_v1, 0.0  ;;  %2048 = vmatprep.subr.bf16.mxu1 %v2544_v4  ;;  %2084 = vmatprep.mubr.msk.bf16.mxu0 %vm2545_vm1, %v2544_v4  ;;  %v550_v9 = vld [vmem:[%s3144_s9] sm:$0xff]  ;;  %s2550_s8 = smov 112   ;;  %s2551_s24 = smov 48   ;;  %vm618_vm2 = vcmask 64512   ;;  %v2875_v60 = vshrl.u32 %v607_v57, 7 }
  0x78   : > { %457 = vadd.xlane.f32.xlu0 %v456_v2  ;;  %582 = vrot.lane.b32.xlu1 %v551_v8, %s2546_s26  ;;  %v2824_v11 = vld [vmem:[%s3142_s7] sm:$0xff]  ;;  %s2552_s12 = smov 96   ;;  %v2877_v61 = vand.u32 127, %v607_v57  ;;  %s2553_s25 = smov 88   ;;  %vm734_vm4 = vcmask 1043456   ;;  %vm787_vm5 = vcmask 130048  }
  0x79   : > { %s2554_s16 = smov 120   ;;  %s2555_s22 = smov 40  }
  0x7a   : > { %2049 = vmatpush3.bf16.msra.mxu1 %v2270_v5  ;;  %vm611_vm3 = vcmp.le.s32.totalorder %v2877_v61, %v2875_v60  ;;  %s2556_s27 = smov 56   ;;  %p3176_p4 = scmp.ne.s32.totalorder %s3167_s13, 0 }
  0x7b   : > { %2050 = vmatprep.subr.bf16.mxu1 %v2544_v4  ;;  %s2560_s21 = smov [#allocation11]  }
  0x7c   : > { %592 = vrot.lane.b32.xlu1 %v550_v9, %s2546_s26  ;;  %s2469_s28 = sshll.u32 %s2560_s21, 4  ;;  %s2470_s28 = int_to_ptr.vmem [resolvable:$false] %s2469_s28 }
  0x7e   : > { %2051 = vmatpush3.bf16.msra.mxu1 %v2271_v6 }
  0x7f   : > { %2052 = vmatprep.subr.bf16.mxu1 %v2544_v4 }
  0x80   : > { %565 = vrot.lane.b32.xlu1 %v2824_v11, %s2548_s1 }
  0x82   : > { %2053 = vmatpush3.bf16.msra.mxu1 %v2272_v7 }
  0x83   : > { %2058 = vmatprep.subr.bf16.mxu1 %v2544_v4 }
  0x84   : > { %577 = vrot.lane.b32.xlu1 %v550_v9, %s2547_s30 }
  0x8e   : > { %596 = vrot.lane.b32.xlu0 %v551_v8, %s2547_s30 }
  0x92   : > { %554 = vrot.lane.b32.xlu0 %v549_v10, %s2548_s1 }
  0xea   : > { %v583_v27 = vpop.permute.xlu1 %582 }
  0xee   : > { %v593_v29 = vpop.permute.xlu1 %592 }
  0xf2   : > { %v566_v30 = vpop.permute.xlu1 %565 }
  0xf6   : > { %v578_v31 = vpop.permute.xlu1 %577 }
 0x101   : > { %v458_v12 = vpop.xlane.xlu0 %457 }
 0x102   : > { %v460_v13 = vmul.f32 0.015625, %v458_v12 }
 0x104   : > { %v461_v14 = vadd.f32 1e-05, %v460_v13 }
 0x105   : > { %v597_v20 = vpop.permute.xlu0 %596 }
 0x106   : > { %2305 = vrsqrt.f32 %v461_v14 }
 0x109   : > { %v555_v41 = vpop.permute.xlu0 %554 }
 0x113   : > { %v2306_v15 = vpop.eup %2305 }
 0x114   : > { %v463_v17 = vmul.f32 %v2306_v15, %v2788_v0 }
 0x116   : > { %v471_v18 = vmul.f32 %v1938_v16, %v463_v17 }
 0x118   : > { %v472_v19 = vpack.c.bf16 %v471_v18, %v471_v18 }
 0x11a   : > { %2055 = vmatmul.mubr.msk.bf16.vlgmr.msra.gmra.mxu1 %vm455_vm0, %v472_v19 }
 0x11b   : > { %2060 = vmatprep.mubr.msk.bf16.mxu1 %vm2545_vm1, %v2544_v4 }
 0x1da   : > { %v2834_v21 = vpop.f32.mrf.mxu1 }
 0x1db   : > { %v599_v22 = vmul.f32 %v597_v20, %v2834_v21  ;;  %v569_v25 = vmul.f32 %v549_v10, %v2834_v21  ;;  %v585_v28 = vmul.f32 %v583_v27, %v2834_v21  ;;  %v595_v32 = vmul.f32 %v593_v29, %v2834_v21  ;;  %v2273_v20 = vld [vmem:[%s3139_s4] sm:$0xff]  }
 0x1dc   : > { %v2056_v23 = vpop.f32.mrf.mxu1  ;;  %v568_v36 = vmul.f32 %v566_v30, %v2834_v21  ;;  %v580_v40 = vmul.f32 %v578_v31, %v2834_v21  ;;  %v557_v44 = vmul.f32 %v555_v41, %v2834_v21  ;;  %v552_v52 = vmul.f32 %v2824_v11, %v2834_v21 }
 0x1dd   : > { %601 = vrot.lane.b32.xlu1 %v599_v22, %s2549_s2  ;;  %v2893_v14 = vpack.c.bf16 %v2834_v21, %v2834_v21 }
 0x1de   : > { %v545_v24 = vpop.f32.mrf.mxu1 }
 0x1e0   : > { %v2057_v26 = vpop.f32.mrf.mxu1 }
 0x1e1   : > { %571 = vrot.lane.b32.xlu1 %v569_v25, %s2548_s1 }
 0x1e5   : > { %587 = vrot.lane.b32.xlu1 %v585_v28, %s2550_s8 }
 0x24f   : > { %v602_v33 = vpop.permute.xlu1 %601 }
 0x250   : > { %v604_v34 = vadd.f32 %v602_v33, %v595_v32 }
 0x252   : > { %v2843_v35 = vpack.c.bf16 %v604_v34, %v604_v34 }
 0x253   : > { %v572_v37 = vpop.permute.xlu1 %571 }
 0x254   : > { %v574_v38 = vadd.f32 %v572_v37, %v568_v36  ;;  %616 = vrot.lane.b32.xlu1 %v2843_v35, %s2551_s24 }
 0x256   : > { %v2847_v39 = vpack.c.bf16 %v574_v38, %v574_v38 }
 0x257   : > { %v588_v42 = vpop.permute.xlu1 %587 }
 0x258   : > { %v590_v43 = vsub.f32 %v580_v40, %v588_v42  ;;  %613 = vrot.lane.b32.xlu0 %v2847_v39, %s2552_s12 }
 0x25a   : > { %v2852_v45 = vpack.c.bf16 %v590_v43, %v590_v43 }
 0x25c   : > { %666 = vrot.lane.b32.xlu1 %v2852_v45, %s2547_s30  ;;  %559 = vrot.lane.b32.xlu0 %v557_v44, %s2552_s12 }
 0x2c6   : > { %v617_v46 = vpop.permute.xlu1 %616 }
 0x2c7   : > { %v623_v47 = vsel %vm618_vm2, %v617_v46, 0 }
 0x2c8   : > { %2059 = vmatpush3.bf16.xpose.msra.mxu1 %v623_v47  ;;  %2083 = vmatpush3.bf16.xpose.msra.mxu0 %v623_v47 }
 0x2c9   : > { %2064 = vmatprep.subr.bf16.mxu1 %v2544_v4  ;;  %2094 = vmatprep.subr.bf16.mxu0 %v2544_v4 }
 0x2ca   : > { %v614_v48 = vpop.permute.xlu0 %613 }
 0x2ce   : > { %v667_v49 = vpop.permute.xlu1 %666  ;;  %v560_v50 = vpop.permute.xlu0 %559 }
 0x2cf   : > { %v2860_v51 = vsel %vm618_vm2, %v667_v49, 0  ;;  %2061 = vmatmul.mubr.msk.bf16.vlgmr.msra.gmra.mxu1 %vm618_vm2, %v614_v48  ;;  %v562_v53 = vsub.f32 %v552_v52, %v560_v50 }
 0x2d0   : > { %2065 = vmatpush3.bf16.xpose.msra.mxu1 %v2860_v51  ;;  %2066 = vmatprep.mubr.msk.bf16.mxu1 %vm2545_vm1, %v2544_v4 }
 0x2d1   : > { %2070 = vmatprep.subr.bf16.mxu1 %v2544_v4  ;;  %v2869_v54 = vpack.c.bf16 %v562_v53, %v562_v53 }
 0x2d7   : > { %2067 = vmatmul.mubr.msk.bf16.vlgmr.msra.gmra.mxu1 %vm618_vm2, %v2869_v54 }
 0x2d8   : > { %2072 = vmatprep.mubr.msk.bf16.mxu1 %vm2545_vm1, %v2544_v4 }
 0x38f   : > { %v659_v55 = vpop.f32.mrf.mxu1 }
 0x391   : > { %v2062_v56 = vpop.f32.mrf.mxu1 }
 0x393   : > { %v662_v58 = vpop.f32.mrf.mxu1 }
 0x395   : > { %v2063_v59 = vpop.f32.mrf.mxu1 }
 0x397   : > { %v708_v62 = vpop.f32.mrf.mxu1 }
 0x398   : > { %v709_v63 = vadd.f32 %v708_v62, %v659_v55 }
 0x399   : > { %v2068_v1 = vpop.f32.mrf.mxu1 }
 0x39a   : > { %v714_v2 = vmul.f32 0.25, %v709_v63 }
 0x39b   : > { %v711_v3 = vpop.f32.mrf.mxu1 }
 0x39c   : > { %v715_v5 = vsel %vm611_vm3, %v714_v2, -inf }
 0x39d   : > { %v2069_v6 = vpop.f32.mrf.mxu1  ;;  %v716_v7 = vsel %vm618_vm2, %v715_v5, -inf }
 0x39e   : > { %717 = vmax.xlane.f32.xlu1 %v716_v7 }
 0x3af   : > { %832 = vrot.lane.b32.xlu1 %v2847_v39, %s2553_s25 }
 0x3b3   : > { %878 = vrot.lane.b32.xlu1 %v2869_v54, %s2554_s16 }
 0x427   : > { %v718_v8 = vpop.xlane.xlu1 %717 }
 0x428   : > { %v719_v9 = vsub.f32 %v715_v5, %v718_v8 }
 0x42a   : > { %v720_v10 = vmul.f32 1.442695, %v719_v9 }
 0x42b   : > { %v833_v11 = vpop.permute.xlu1 %832 }
 0x42c   : > { %2307 = vpow2.f32 %v720_v10  ;;  %2085 = vmatmul.mubr.msk.bf16.vlgmr.msra.gmra.mxu0 %vm618_vm2, %v833_v11 }
 0x42d   : > { %2096 = vmatprep.mubr.msk.bf16.mxu0 %vm2545_vm1, %v2544_v4 }
 0x42f   : > { %v879_v31 = vpop.permute.xlu1 %878 }
 0x439   : > { %v2308_v12 = vpop.eup %2307 }
 0x43a   : > { %v722_v13 = vsel %vm618_vm2, %v2308_v12, 0.0 }
 0x43b   : > { %723 = vadd.xlane.f32.xlu0 %v722_v13 }
 0x451   : > { %729 = vrot.lane.b32.xlu0 %v2893_v14, %s2548_s1 }
 0x4c4   : > { %v724_v15 = vpop.xlane.xlu0 %723 }
 0x4c5   : > { %2309 = vrcp.f32 %v724_v15 }
 0x4c8   : > { %v730_v16 = vpop.permute.xlu0 %729 }
 0x4c9   : > { %v736_v17 = vsel %vm734_vm4, %v730_v16, 0 }
 0x4ca   : > { %2071 = vmatpush3.bf16.msra.mxu1 %v736_v17  ;;  %2095 = vmatpush3.bf16.msra.mxu0 %v736_v17 }
 0x4cb   : > { %2076 = vmatprep.subr.bf16.mxu1 %v2544_v4  ;;  %2106 = vmatprep.subr.bf16.mxu0 %v2544_v4 }
 0x4d2   : > { %v2310_v18 = vpop.eup %2309 }
 0x4d3   : > { %v726_v19 = vmul.f32 %v2310_v18, %v2308_v12 }
 0x4d5   : > { %v727_v21 = vpack.c.bf16 %v726_v19, %v726_v19 }
 0x4d7   : > { %2073 = vmatmul.mubr.msk.bf16.vlgmr.msra.gmra.mxu1 %vm618_vm2, %v727_v21 }
 0x4d8   : > { %2077 = vmatpush3.bf16.msra.mxu1 %v2273_v20  ;;  %2078 = vmatprep.mubr.msk.bf16.mxu1 %vm2545_vm1, %v2544_v4 }
 0x4d9   : > { %2088 = vmatprep.subr.bf16.mxu1 %v2544_v4 }
 0x4ec   : > { %v871_v22 = vpop.f32.mrf.mxu0 }
 0x4ee   : > { %v2086_v23 = vpop.f32.mrf.mxu0 }
 0x4f0   : > { %v874_v24 = vpop.f32.mrf.mxu0 }
 0x4f2   : > { %v2087_v25 = vpop.f32.mrf.mxu0 }
 0x597   : > { %v772_v26 = vpop.f32.mrf.mxu1 }
 0x598   : > { %v778_v27 = vpack.c.bf16 %v772_v26, %v772_v26 }
 0x599   : > { %v2074_v28 = vpop.f32.mrf.mxu1 }
 0x59a   : > { %2079 = vmatmul.mubr.msk.bf16.vlgmr.msra.gmra.mxu1 %vm787_vm5, %v778_v27 }
 0x59b   : > { %2089 = vmatpush3.bf16.xpose.msra.mxu1 %v2860_v51  ;;  %v775_v29 = vpop.f32.mrf.mxu1  ;;  %2090 = vmatprep.mubr.msk.bf16.mxu1 %vm2545_vm1, %v2544_v4 }
 0x59c   : > { %2100 = vmatprep.subr.bf16.mxu1 %v2544_v4 }
 0x59d   : > { %v2075_v30 = vpop.f32.mrf.mxu1 }
 0x5a2   : > { %2091 = vmatmul.mubr.msk.bf16.vlgmr.msra.gmra.mxu1 %vm618_vm2, %v879_v31 }
 0x5a3   : > { %2102 = vmatprep.mubr.msk.bf16.mxu1 %vm2545_vm1, %v2544_v4 }
 0x65a   : > { %v825_v32 = vpop.f32.mrf.mxu1 }
 0x65b   : > { %v831_v11 = vadd.f32 %v825_v32, %v2788_v0 }
 0x65c   : > { %v2080_v33 = vpop.f32.mrf.mxu1 }
 0x65e   : > { %v828_v34 = vpop.f32.mrf.mxu1 }
 0x660   : > { %v2081_v36 = vpop.f32.mrf.mxu1 }
 0x662   : > { %v917_v37 = vpop.f32.mrf.mxu1 }
 0x663   : > { %v918_v38 = vadd.f32 %v917_v37, %v871_v22 }
 0x664   : > { %v2092_v40 = vpop.f32.mrf.mxu1 }
 0x665   : > { %v923_v41 = vmul.f32 0.25, %v918_v38 }
 0x666   : > { %v920_v42 = vpop.f32.mrf.mxu1 }
 0x667   : > { %v924_v43 = vsel %vm611_vm3, %v923_v41, -inf }
 0x668   : > { %v2093_v44 = vpop.f32.mrf.mxu1  ;;  %v925_v46 = vsel %vm618_vm2, %v924_v43, -inf }
 0x669   : > { %926 = vmax.xlane.f32.xlu0 %v925_v46 }
 0x67f   : > { %1036 = vrot.lane.b32.xlu0 %v2843_v35, %s2555_s22  ;;  %v2274_v35 = vld [vmem:[%s3139_s4 + $0x8] sm:$0xff]   ;;  %s2471_s22 = scalar_lea.vmem %s2470_s28, 256 }
 0x680   : > { %2101 = vmatpush3.bf16.msra.mxu1 %v2274_v35 }
 0x681   : > { %2112 = vmatprep.subr.bf16.mxu1 %v2544_v4 }
 0x683   : > { %1034 = vrot.lane.b32.xlu0 %v2847_v39, %s2546_s26  ;;  %s2557_s26 = smov 104  }
 0x6f2   : > { %v927_v47 = vpop.xlane.xlu0 %926 }
 0x6f3   : > { %v928_v48 = vsub.f32 %v924_v43, %v927_v47 }
 0x6f5   : > { %v929_v49 = vmul.f32 1.442695, %v928_v48 }
 0x6f6   : > { %v1037_v56 = vpop.permute.xlu0 %1036 }
 0x6f7   : > { %2311 = vpow2.f32 %v929_v49  ;;  %v2931_v58 = vsel %vm618_vm2, %v1037_v56, 0 }
 0x704   : > { %v2312_v50 = vpop.eup %2311 }
 0x705   : > { %v931_v51 = vsel %vm618_vm2, %v2312_v50, 0.0 }
 0x706   : > { %932 = vadd.xlane.f32.xlu1 %v931_v51 }
 0x717   : > { %1086 = vrot.lane.b32.xlu1 %v2852_v45, %s2556_s27  ;;  %v1035_v45 = vpop.permute.xlu0 %1034 }
 0x71b   : > { %1084 = vrot.lane.b32.xlu1 %v2869_v54, %s2550_s8  ;;  %s2558_s8 = smov 72  }
 0x78f   : > { %v933_v52 = vpop.xlane.xlu1 %932 }
 0x790   : > { %2313 = vrcp.f32 %v933_v52 }
 0x793   : > { %v1087_v59 = vpop.permute.xlu1 %1086 }
 0x794   : > { %v2942_v2 = vsel %vm618_vm2, %v1087_v59, 0 }
 0x797   : > { %v1085_v7 = vpop.permute.xlu1 %1084 }
 0x79d   : > { %v2314_v53 = vpop.eup %2313 }
 0x79e   : > { %v935_v55 = vmul.f32 %v2314_v53, %v2312_v50 }
 0x7a0   : > { %v936_v57 = vpack.c.bf16 %v935_v55, %v935_v55 }
 0x7a2   : > { %2097 = vmatmul.mubr.msk.bf16.vlgmr.msra.gmra.mxu0 %vm618_vm2, %v936_v57 }
 0x7a3   : > { %2107 = vmatpush3.bf16.xpose.msra.mxu0 %v2931_v58  ;;  %2108 = vmatprep.mubr.msk.bf16.mxu0 %vm2545_vm1, %v2544_v4 }
 0x7a4   : > { %2118 = vmatprep.subr.bf16.mxu0 %v2544_v4 }
 0x7aa   : > { %2109 = vmatmul.mubr.msk.bf16.vlgmr.msra.gmra.mxu0 %vm618_vm2, %v1035_v45 }
 0x7ab   : > { %2120 = vmatprep.mubr.msk.bf16.mxu0 %vm2545_vm1, %v2544_v4 }
 0x862   : > { %v974_v62 = vpop.f32.mrf.mxu0 }
 0x863   : > { %v980_v63 = vpack.c.bf16 %v974_v62, %v974_v62 }
 0x864   : > { %v2098_v1 = vpop.f32.mrf.mxu0 }
 0x865   : > { %2103 = vmatmul.mubr.msk.bf16.vlgmr.msra.gmra.mxu1 %vm787_vm5, %v980_v63 }
 0x866   : > { %2113 = vmatpush3.bf16.xpose.msra.mxu1 %v2942_v2  ;;  %v977_v3 = vpop.f32.mrf.mxu0  ;;  %2114 = vmatprep.mubr.msk.bf16.mxu1 %vm2545_vm1, %v2544_v4 }
 0x867   : > { %2124 = vmatprep.subr.bf16.mxu1 %v2544_v4 }
 0x868   : > { %v2099_v5 = vpop.f32.mrf.mxu0 }
 0x869   : > { %v2276_v5 = vld [vmem:[%s3139_s4 + $0x18] sm:$0xff]  }
 0x86a   : > { %v1078_v6 = vpop.f32.mrf.mxu0 }
 0x86c   : > { %v2110_v8 = vpop.f32.mrf.mxu0 }
 0x86d   : > { %2115 = vmatmul.mubr.msk.bf16.vlgmr.msra.gmra.mxu1 %vm618_vm2, %v1085_v7 }
 0x86e   : > { %v1081_v9 = vpop.f32.mrf.mxu0  ;;  %2126 = vmatprep.mubr.msk.bf16.mxu1 %vm2545_vm1, %v2544_v4 }
 0x870   : > { %v2111_v10 = vpop.f32.mrf.mxu0 }
 0x925   : > { %v1027_v12 = vpop.f32.mrf.mxu1 }
 0x926   : > { %v1033_v13 = vadd.f32 %v1027_v12, %v831_v11 }
 0x927   : > { %v2104_v15 = vpop.f32.mrf.mxu1 }
 0x929   : > { %v1030_v16 = vpop.f32.mrf.mxu1 }
 0x92b   : > { %v2105_v17 = vpop.f32.mrf.mxu1 }
 0x92d   : > { %v1128_v18 = vpop.f32.mrf.mxu1 }
 0x92e   : > { %v1129_v19 = vadd.f32 %v1128_v18, %v1078_v6 }
 0x92f   : > { %v2116_v20 = vpop.f32.mrf.mxu1 }
 0x930   : > { %v1134_v21 = vmul.f32 0.25, %v1129_v19 }
 0x931   : > { %v1131_v22 = vpop.f32.mrf.mxu1 }
 0x932   : > { %v1135_v23 = vsel %vm611_vm3, %v1134_v21, -inf  ;;  %v2277_v21 = vld [vmem:[%s3140_s5 + $0x48] ss:$12 sps:$4 sm:$0xff]   ;;  %v2279_v22 = vld [vmem:[%s3140_s5 + $0x4c] ss:$12 sps:$4 sm:$0xff]  }
 0x933   : > { %v2117_v24 = vpop.f32.mrf.mxu1  ;;  %v1136_v25 = vsel %vm618_vm2, %v1135_v23, -inf }
 0x934   : > { %1137 = vmax.xlane.f32.xlu0 %v1136_v25  ;;  %v2283_v24 = vld [vmem:[%s3140_s5 + $0x34] ss:$12 sps:$4 sm:$0xff]   ;;  %v2284_v25 = vld [vmem:[%s3140_s5 + $0x38] ss:$12 sps:$4 sm:$0xff]  }
 0x94a   : > { %1148 = vrot.lane.b32.xlu0 %v2893_v14, %s2549_s2  ;;  %s451_s2 = scalar_lea.vmem [#allocation11], %s1932_s15 }
 0x94b   : > { %s1814_s24 = sshll.u32 %s451_s2, 4  ;;  %s3093_s24 = int_to_ptr.vmem [resolvable:$true] %s1814_s24 }
 0x94c   : > { %s2465_s15 = scalar_lea.vmem %s3093_s24, 128  ;;  %p2472_p2 = scmp.lt.s32.totalorder %s3093_s24, %s2470_s28 }
 0x94d   : > { %p2466_p3 = scmp.ne.s32.totalorder %s3093_s24, %s2465_s15  ;;  %p2473_p5 = scmp.lt.s32.totalorder %s2471_s22, %s2465_s15 }
 0x94e   : > { %1295 = vrot.lane.b32.xlu0 %v2869_v54, %s2557_s26  ;;  %v2275_v54 = vld [vmem:[%s3139_s4 + $0x10] sm:$0xff]  }
 0x94f   : > { %2125 = vmatpush3.bf16.msra.mxu1 %v2275_v54  ;;  %v2289_v54 = vld [vmem:[%s3140_s5] ss:$12 sps:$4 sm:$0xff]   ;;  %p2467_p13 = pnand %p2466_p3, %p3176_p4  ;;  %p2474_p11 = por %p2473_p5, %p2472_p2 }
 0x950   : > { %2136 = vmatprep.subr.bf16.mxu1 %v2544_v4 }
 0x951   : > { %p2468_p0 = pneg %p2467_p13 }
 0x953   : > { %p2475_p12 = pnand %p2474_p11, %p2468_p0 }
 0x9bd   : > { %v1138_v0 = vpop.xlane.xlu0 %1137 }
 0x9be   : > { %v1139_v26 = vsub.f32 %v1135_v23, %v1138_v0  ;;  %v2280_v23 = vld [vmem:[%s3140_s5 + $0x50] ss:$12 sps:$4 sm:$0xff]  }
 0x9bf   : > { %v2281_v0 = vld [vmem:[%s3140_s5 + $0x30] ss:$12 sps:$4 sm:$0xff]  }
 0x9c0   : > { %v1140_v27 = vmul.f32 1.442695, %v1139_v26  ;;  %v2287_v26 = vld [vmem:[%s3140_s5 + $0x1c] ss:$12 sps:$4 sm:$0xff]  }
 0x9c1   : > { %v1149_v28 = vpop.permute.xlu0 %1148 }
 0x9c2   : > { %2315 = vpow2.f32 %v1140_v27  ;;  %v1154_v29 = vsel %vm734_vm4, %v1149_v28, 0  ;;  %v2559_v27 = vmov 0   ;;  %v2288_v28 = vld [vmem:[%s3140_s5 + $0x20] ss:$12 sps:$4 sm:$0xff]  }
 0x9c3   : > { %2119 = vmatpush3.bf16.msra.mxu0 %v1154_v29 }
 0x9c4   : > { %2130 = vmatprep.subr.bf16.mxu0 %v2544_v4 }
 0x9c5   : > { %v1296_v43 = vpop.permute.xlu0 %1295 }
 0x9cf   : > { %v2316_v30 = vpop.eup %2315 }
 0x9d0   : > { %v1142_v31 = vsel %vm618_vm2, %v2316_v30, 0.0 }
 0x9d1   : > { %1143 = vadd.xlane.f32.xlu1 %v1142_v31  ;;  %v2292_v31 = vld [vmem:[%s3140_s5 + $0x8] ss:$12 sps:$4 sm:$0xff]  }
 0x9e2   : > { %1250 = vrot.lane.b32.xlu1 %v2847_v39, %s2558_s8 }
 0xa5a   : > { %v1144_v14 = vpop.xlane.xlu1 %1143 }
 0xa5b   : > { %2317 = vrcp.f32 %v1144_v14 }
 0xa5e   : > { %v1251_v39 = vpop.permute.xlu1 %1250 }
 0xa68   : > { %v2318_v32 = vpop.eup %2317 }
 0xa69   : > { %v1146_v33 = vmul.f32 %v2318_v32, %v2316_v30  ;;  %v2291_v30 = vld [vmem:[%s3140_s5 + $0x4] ss:$12 sps:$4 sm:$0xff]  }
 0xa6b   : > { %v1147_v34 = vpack.c.bf16 %v1146_v33, %v1146_v33 }
 0xa6d   : > { %2121 = vmatmul.mubr.msk.bf16.vlgmr.msra.gmra.mxu0 %vm618_vm2, %v1147_v34 }
 0xa6e   : > { %2131 = vmatpush3.bf16.xpose.msra.mxu0 %v2931_v58  ;;  %2132 = vmatprep.mubr.msk.bf16.mxu0 %vm2545_vm1, %v2544_v4 }
 0xa6f   : > { %2142 = vmatprep.subr.bf16.mxu0 %v2544_v4 }
 0xa75   : > { %2133 = vmatmul.mubr.msk.bf16.vlgmr.msra.gmra.mxu0 %vm618_vm2, %v1251_v39  ;;  %v1970_v39 = vld [vmem:[#allocation7] ss:$0 sm:$0xff] }
 0xa76   : > { %2143 = vmatpush3.bf16.msra.mxu0 %v1154_v29  ;;  %2144 = vmatprep.mubr.msk.bf16.mxu0 %vm2545_vm1, %v2544_v4  ;;  %v2285_v29 = vld [vmem:[%s3140_s5 + $0x18] ss:$12 sps:$4 sm:$0xff]  }
 0xa77   : > { %1559 = vmatprep.subr.bf16.mxu0 %v2279_v22 }
 0xb2d   : > { %v1190_v36 = vpop.f32.mrf.mxu0 }
 0xb2e   : > { %v1196_v37 = vpack.c.bf16 %v1190_v36, %v1190_v36 }
 0xb2f   : > { %v2122_v38 = vpop.f32.mrf.mxu0 }
 0xb30   : > { %2127 = vmatmul.mubr.msk.bf16.vlgmr.msra.gmra.mxu1 %vm787_vm5, %v1196_v37 }
 0xb31   : > { %2137 = vmatpush3.bf16.xpose.msra.mxu1 %v2942_v2  ;;  %v1193_v40 = vpop.f32.mrf.mxu0  ;;  %2138 = vmatprep.mubr.msk.bf16.mxu1 %vm2545_vm1, %v2544_v4 }
 0xb32   : > { %2148 = vmatprep.subr.bf16.mxu1 %v2544_v4  ;;  %v2294_v40 = vld [vmem:[%s3141_s6 + $0x30] sm:$0xff]  }
 0xb33   : > { %v2123_v41 = vpop.f32.mrf.mxu0 }
 0xb34   : > { %v2295_v41 = vld [vmem:[%s3141_s6 + $0x28] sm:$0xff]  }
 0xb35   : > { %v1289_v42 = vpop.f32.mrf.mxu0 }
 0xb37   : > { %v2134_v44 = vpop.f32.mrf.mxu0 }
 0xb38   : > { %2139 = vmatmul.mubr.msk.bf16.vlgmr.msra.gmra.mxu1 %vm618_vm2, %v1296_v43  ;;  %v2297_v43 = vld [vmem:[%s3141_s6 + $0x18] sm:$0xff]   ;;  %v2298_v44 = vld [vmem:[%s3141_s6 + $0x10] sm:$0xff]  }
 0xb39   : > { %v1292_v46 = vpop.f32.mrf.mxu0  ;;  %2150 = vmatprep.mubr.msk.bf16.mxu1 %vm2545_vm1, %v2544_v4  ;;  %2149 = vmatpush3.bf16.msra.mxu1 %v2276_v5 }
 0xb3a   : > { %2154 = vmatprep.subr.bf16.mxu1 %v2544_v4  ;;  %v2299_v46 = vld [vmem:[%s3141_s6 + $0x8] sm:$0xff]  }
 0xb3b   : > { %v2135_v47 = vpop.f32.mrf.mxu0 }
 0xb3c   : > { %v2300_v47 = vld [vmem:[%s3141_s6] sm:$0xff]  }
 0xbf0   : > { %v1243_v48 = vpop.f32.mrf.mxu1 }
 0xbf1   : > { %v1249_v49 = vadd.f32 %v1243_v48, %v1033_v13  ;;  %v2301_v48 = vld [vmem:[%s3141_s6 + $0x58] sm:$0xff]  }
 0xbf2   : > { %v2128_v50 = vpop.f32.mrf.mxu1 }
 0xbf3   : > { %v2303_v50 = vld [vmem:[%s3141_s6 + $0x48] sm:$0xff]  }
 0xbf4   : > { %v1246_v51 = vpop.f32.mrf.mxu1 }
 0xbf5   : > { %v2304_v51 = vld [vmem:[%s3141_s6 + $0x40] sm:$0xff]  }
 0xbf6   : > { %v2129_v35 = vpop.f32.mrf.mxu1 }
 0xbf8   : > { %v1334_v52 = vpop.f32.mrf.mxu1 }
 0xbf9   : > { %v1335_v53 = vadd.f32 %v1334_v52, %v1289_v42  ;;  %v2296_v42 = vld [vmem:[%s3141_s6 + $0x20] sm:$0xff]  }
 0xbfa   : > { %v2140_v55 = vpop.f32.mrf.mxu1 }
 0xbfb   : > { %v1340_v56 = vmul.f32 0.25, %v1335_v53 }
 0xbfc   : > { %v1337_v57 = vpop.f32.mrf.mxu1 }
 0xbfd   : > { %v1341_v58 = vsel %vm611_vm3, %v1340_v56, -inf }
 0xbfe   : > { %v2141_v45 = vpop.f32.mrf.mxu1  ;;  %v1342_v59 = vsel %vm618_vm2, %v1341_v58, -inf }
 0xbff   : > { %1343 = vmax.xlane.f32.xlu1 %v1342_v59 }
 0xc88   : > { %v1344_v62 = vpop.xlane.xlu1 %1343 }
 0xc89   : > { %v1345_v63 = vsub.f32 %v1341_v58, %v1344_v62 }
 0xc8b   : > { %v1346_v1 = vmul.f32 1.442695, %v1345_v63 }
 0xc8d   : > { %2319 = vpow2.f32 %v1346_v1 }
 0xc9a   : > { %v2320_v2 = vpop.eup %2319 }
 0xc9b   : > { %v1348_v3 = vsel %vm618_vm2, %v2320_v2, 0.0 }
 0xc9c   : > { %1349 = vadd.xlane.f32.xlu0 %v1348_v3 }
 0xd25   : > { %v1350_v60 = vpop.xlane.xlu0 %1349 }
 0xd26   : > { %2321 = vrcp.f32 %v1350_v60 }
 0xd33   : > { %v2322_v61 = vpop.eup %2321 }
 0xd34   : > { %v1352_v6 = vmul.f32 %v2322_v61, %v2320_v2 }
 0xd36   : > { %v1353_v7 = vpack.c.bf16 %v1352_v6, %v1352_v6 }
 0xd38   : > { %2145 = vmatmul.mubr.msk.bf16.vlgmr.msra.gmra.mxu0 %vm618_vm2, %v1353_v7 }
 0xd39   : > { %1560 = vmatpush1.bf16.msra.mxu0 %v2277_v21  ;;  %1583 = vmatprep.mubr.bf16.mxu0 %v2559_v27 }
 0xd3a   : > { %1561 = vmatprep.subr.bf16.mxu0 %v2283_v24 }
 0xd3d   : > { %1562 = vmatpush1.bf16.msra.mxu0 %v2281_v0 }
 0xd3e   : > { %1563 = vmatprep.subr.bf16.mxu0 %v2287_v26 }
 0xd41   : > { %1564 = vmatpush1.bf16.msra.mxu0 %v2285_v29 }
 0xd42   : > { %1565 = vmatprep.subr.bf16.mxu0 %v2291_v30 }
 0xd45   : > { %1566 = vmatpush1.bf16.msra.mxu0 %v2289_v54 }
 0xd46   : > { %1758 = vmatprep.subr.bf16.mxu0 %v2559_v27 }
 0xdf8   : > { %v1391_v8 = vpop.f32.mrf.mxu0 }
 0xdf9   : > { %v1397_v9 = vpack.c.bf16 %v1391_v8, %v1391_v8 }
 0xdfa   : > { %v2146_v10 = vpop.f32.mrf.mxu0 }
 0xdfb   : > { %2151 = vmatmul.mubr.msk.bf16.vlgmr.msra.gmra.mxu1 %vm787_vm5, %v1397_v9 }
 0xdfc   : > { %v1394_v11 = vpop.f32.mrf.mxu0  ;;  %2162 = vmatprep.mubr.msk.bf16.mxu1 %vm2545_vm1, %v2544_v4  ;;  %2155 = vmatpush3.bf16.msra.mxu1 %v2280_v23 }
 0xdfd   : > { %2156 = vmatprep.subr.bf16.mxu1 %v2544_v4 }
 0xdfe   : > { %v2147_v12 = vpop.f32.mrf.mxu0 }
 0xe00   : > { %2157 = vmatpush3.bf16.msra.mxu1 %v2284_v25 }
 0xe01   : > { %2158 = vmatprep.subr.bf16.mxu1 %v2544_v4 }
 0xe04   : > { %2159 = vmatpush3.bf16.msra.mxu1 %v2288_v28 }
 0xe05   : > { %2160 = vmatprep.subr.bf16.mxu1 %v2544_v4  ;;  %v2293_v4 = vld [vmem:[%s3141_s6 + $0x38] sm:$0xff]  }
 0xe08   : > { %2161 = vmatpush3.bf16.msra.mxu1 %v2292_v31 }
 0xebb   : > { %v1444_v13 = vpop.f32.mrf.mxu1 }
 0xebc   : > { %v2997_v15 = vadd.f32 %v1444_v13, %v1249_v49  ;;  %v2302_v49 = vld [vmem:[%s3141_s6 + $0x50] sm:$0xff]  }
 0xebd   : > { %v2152_v16 = vpop.f32.mrf.mxu1 }
 0xebe   : > { %v1451_v17 = vmul.f32 %v2997_v15, %v2997_v15 }
 0xebf   : > { %v1447_v18 = vpop.f32.mrf.mxu1 }
 0xec0   : > { %v1452_v19 = vsel %vm455_vm0, %v1451_v17, 0.0 }
 0xec1   : > { %1453 = vadd.xlane.f32.xlu0 %v1452_v19  ;;  %v2153_v20 = vpop.f32.mrf.mxu1 }
 0xf4a   : > { %v1454_v14 = vpop.xlane.xlu0 %1453 }
 0xf4b   : > { %v1455_v32 = vmul.f32 0.015625, %v1454_v14 }
 0xf4d   : > { %v1456_v33 = vadd.f32 1e-05, %v1455_v32 }
 0xf4f   : > { %2323 = vrsqrt.f32 %v1456_v33 }
 0xf5c   : > { %v2324_v34 = vpop.eup %2323 }
 0xf5d   : > { %v1458_v36 = vmul.f32 %v2324_v34, %v2997_v15 }
 0xf5f   : > { %v1466_v37 = vmul.f32 %v1970_v39, %v1458_v36 }
 0xf61   : > { %v1467_v38 = vpack.c.bf16 %v1466_v37, %v1466_v37 }
 0xf63   : > { %1983 = vmatmul.mubr.msk.bf16.vlgmr.msra.gmra.mxu0 %vm455_vm0, %v1467_v38  ;;  %2163 = vmatmul.mubr.msk.bf16.vlgmr.msra.gmra.mxu1 %vm455_vm0, %v1467_v38 }
 0xf64   : > { %1759 = vmatpush1.bf16.msra.mxu0 %v2293_v4 }
 0xf65   : > { %1760 = vmatprep.subr.bf16.mxu0 %v2559_v27 }
 0xf68   : > { %1761 = vmatpush1.bf16.msra.mxu0 %v2294_v40 }
 0xf69   : > { %1762 = vmatprep.subr.bf16.mxu0 %v2559_v27 }
 0xf6c   : > { %1763 = vmatpush1.bf16.msra.mxu0 %v2295_v41 }
 0xf6d   : > { %1764 = vmatprep.subr.bf16.mxu0 %v2559_v27 }
 0xf70   : > { %1765 = vmatpush1.bf16.msra.mxu0 %v2296_v42 }
 0xf71   : > { %1766 = vmatprep.subr.bf16.mxu0 %v2559_v27 }
 0xf74   : > { %1767 = vmatpush1.bf16.msra.mxu0 %v2297_v43 }
 0xf75   : > { %1768 = vmatprep.subr.bf16.mxu0 %v2559_v27 }
 0xf78   : > { %1769 = vmatpush1.bf16.msra.mxu0 %v2298_v44 }
 0xf79   : > { %1770 = vmatprep.subr.bf16.mxu0 %v2559_v27 }
 0xf7c   : > { %1771 = vmatpush1.bf16.msra.mxu0 %v2299_v46 }
 0xf7d   : > { %1772 = vmatprep.subr.bf16.mxu0 %v2559_v27 }
 0xf80   : > { %1773 = vmatpush1.bf16.msra.mxu0 %v2300_v47 }
 0xf81   : > { %1782 = vmatprep.subr.bf16.mxu0 %v2559_v27 }
 0xf84   : > { %1783 = vmatpush2.bf16.msra.mxu0 %v2301_v48 }
 0xf85   : > { %1784 = vmatprep.subr.bf16.mxu0 %v2559_v27 }
 0xf88   : > { %1785 = vmatpush2.bf16.msra.mxu0 %v2302_v49 }
 0xf89   : > { %1786 = vmatprep.subr.bf16.mxu0 %v2559_v27 }
 0xf8c   : > { %1787 = vmatpush2.bf16.msra.mxu0 %v2303_v50 }
 0xf8d   : > { %1788 = vmatprep.subr.bf16.mxu0 %v2559_v27 }
 0xf90   : > { %1789 = vmatpush2.bf16.msra.mxu0 %v2304_v51 }
0x1023   : > { %v1585_v35 = vpop.f32.mrf.mxu0  ;;  %v1626_v52 = vpop.f32.mrf.mxu1 }
0x1024   : > { %1650 = vrot.lane.b32.xlu0 %v1626_v52, %s2547_s30  ;;  %v1985_v62 = vmul.f32 -1.442695, %v1585_v35 }
0x1025   : > { %v1587_v53 = vpop.f32.mrf.mxu0  ;;  %v2164_v55 = vpop.f32.mrf.mxu1 }
0x1026   : > { %1648 = vrot.lane.b32.xlu1 %v1587_v53, %s2547_s30  ;;  %v1986_v59 = vmul.f32 -1.442695, %v1587_v53  ;;  %s2001_s30 = sshll.u32 %s2642_s23, 7  ;;  %s1801_s23 = scalar_lea.sflag [#allocation4], %s2770_s10 }
0x1027   : > { %v1589_v56 = vpop.f32.mrf.mxu0  ;;  %v1629_v57 = vpop.f32.mrf.mxu1  ;;  %s3091_s16 = scalar_lea.hbm %s3146_s11, %s2001_s30 }
0x1028   : > { %2325 = vpow2.f32 %v1986_v59 }
0x1029   : > { %v1590_v58 = vpop.f32.mrf.mxu0  ;;  %v2165_v45 = vpop.f32.mrf.mxu1  ;;  %2327 = vpow2.f32 %v1985_v62 }
0x1035   : > { %v2326_v63 = vpop.eup %2325 }
0x1036   : > { %v2328_v1 = vpop.eup %2327  ;;  %v1639_v2 = vadd.f32 1.0, %v2326_v63 }
0x1037   : > { %v1638_v3 = vadd.f32 1.0, %v2328_v1 }
0x1038   : > { %2329 = vrcp.f32 %v1639_v2 }
0x1039   : > { %2331 = vrcp.f32 %v1638_v3 }
0x1045   : > { %v2330_v5 = vpop.eup %2329 }
0x1046   : > { %v2332_v60 = vpop.eup %2331  ;;  %v1645_v61 = vmul.f32 %v2330_v5, %v1587_v53 }
0x1047   : > { %v1644_v8 = vmul.f32 %v2332_v60, %v1585_v35 }
0x1096   : > { %v1651_v6 = vpop.permute.xlu0 %1650 }
0x1097   : > { %v1656_v7 = vmul.f32 %v1651_v6, %v1645_v61 }
0x1098   : > { %v1649_v9 = vpop.permute.xlu1 %1648 }
0x1099   : > { %v1658_v10 = vpack.c.bf16 %v1656_v7, %v1656_v7  ;;  %v1652_v11 = vsel %vm455_vm0, %v1649_v9, %v1651_v6 }
0x109a   : > { %v1655_v12 = vmul.f32 %v1652_v11, %v1644_v8 }
0x109b   : > { %1999 = vmatprep.mubr.msk.bf16.mxu0 %vm455_vm0, %v1658_v10 }
0x109c   : > { %v1657_v13 = vpack.c.bf16 %v1655_v12, %v1655_v12 }
0x109e   : > { %1791 = vmatmul.mubr.bf16.vlgmr.msra.gmra.mxu0 %v1657_v13 }
0x115e   : > { %v1792_v16 = vpop.f32.mrf.mxu0 }
0x115f   : > { %v1798_v17 = vadd.f32 %v1792_v16, %v2997_v15 }
0x1160   : > { %v1794_v18 = vpop.f32.mrf.mxu0 }
0x1161   : > { %1799 = vst.msk [vmem:[%s451_s2] sm:$0xff] %vm455_vm0, %v1798_v17 }
0x1162   : > { %v1795_v19 = vpop.f32.mrf.mxu0 }
0x1163   : > { %2478 = shalt.err (!%p2475_p12)
}
0x1164   : > { %s2479_s27 = scalar_lea.hbm %s3091_s16, 128  ;;  %s2483_s1 = scalar_lea.hbm %s3146_s11, 256 }
0x1165   : > { %p2480_p1 = scmp.ne.s32.totalorder %s3091_s16, %s2479_s27  ;;  %p2484_p9 = scmp.lt.s32.totalorder %s3091_s16, %s3146_s11 }
0x1166   : > { %p2485_p10 = scmp.lt.s32.totalorder %s2483_s1, %s2479_s27 }
0x1167   : > { %p2481_p8 = pnand %p2480_p1, %p3176_p4 }
0x1168   : > { %p2486_p7 = por %p2485_p10, %p2484_p9 }
0x1169   : > { %p2482_p6 = pneg %p2481_p8 }
0x116b   : > { %p2487_p3 = pnand %p2486_p7, %p2482_p6 }
0x116d   : > { %2490 = shalt.err (!%p2487_p3)
}
0x116e   : > { %2184 = dma.vmem_to_hbm [thread:$0]  (%p3176_p4), %s3093_s24, 128, %s3091_s16, %s1801_s23   ;;  %v1796_v15 = vpop.f32.mrf.mxu0 }
0x116f PF: > { %s1826_s30 = sand.u32 1, %s2525_s17   ;;  %p3177_p13 = scmp.ne.s32.totalorder %s3168_s14, 0 }
0x1170   : > { %p3178_p0 = scmp.ge.s32.totalorder %s2537_s20, 2  ;;  %s1827_s2 = scalar_lea.sflag [#allocation4], %s1826_s30 }
0x1172   : > { %p2204_p2 = pnand %p3178_p0, %p3177_p13 }
0x1174   : > { %p2205_p5 = pneg %p2204_p2 }
0x1176   : > { %2520 = dma.done.wait (%p2205_p5), %s1827_s2, 128  }
0x1177   : > { %2522 = vsyncadd (%p2205_p5), %s1827_s2, 4294967168  ;;  %s3179_s12 = sld [smem:[#allocation16_spill]]  ;;  %p26_p11 = scmp.ge.s32.totalorder %s2707_s29, 4  }
0x1178   : > { %s3180_s19 = sld [smem:[#allocation17_spill]]  ;;  %s3181_s17 = smov %s2529_s18 }
0x1179   : > { %s3183_s20 = smov %s2707_s29  ;;  %28 = sbr.rel (!%p26_p11) target bundleno = 12 (0xc), region = 128 }
0x117d   : > { %s3182_s18 = smov %s3179_s12 }
0x117e   :  { %1832 = vsyncpa [#allocation3], 1 }
0x117f   :  { %1834 = vsyncpa [#allocation3 + $0x1], 1 }
0x1180   :  { %1835 = vsyncpa [#allocation6], 1 }
0x1181   :  { %1836 = vsyncpa [#allocation9], 1 }
0x1182   :  { %1837 = vsyncpa [#allocation4], 1 }
0x1183   :  { %1839 = vsyncpa [#allocation4 + $0x1], 1 }

</bundles_post_ra>
